<compile_context>
chip_gen: v7x
topology: tpu7x:2x2x1
jax: 0.10.0
libtpu: 0.0.40
codegen_flags: <defaults>
</compile_context>

<pallas_src>
import functools

import numpy as np
import jax
import jax.numpy as jnp
from jax import lax
from jax.experimental import pallas as pl
from jax.experimental.pallas import tpu as pltpu


def _round_up(x, m):
    return (x + m - 1) // m * m


def _largest_divisor_leq(n, cap):
    best = 1
    for d in range(1, n + 1):
        if n % d == 0 and d <= cap:
            best = d
    return best


# ----------------------------------------------------------------------------
# Pallas kernel: all four output parities of the stride-2 transposed conv,
# fused with folded BN affine (+bias) and ReLU.
# ----------------------------------------------------------------------------
def _upsampler_kernel(xm_ref, xh_ref, w_ref, s_ref, t_ref,
                      ee_ref, eo_ref, oe_ref, oo_ref, *, wp):
    """
    xm_ref : (R, Cin)  bf16  R = TH*Wp rows of the zero-padded, flattened input tile
    xh_ref : (Wp, Cin) bf16  one-row halo (row below this tile; zeros at image bottom)
    w_ref  : (9, Cin, Cp) bf16  ConvTranspose tap matrices, index = kh*3 + kw
    s_ref, t_ref : (1, Cp) f32  folded BN scale / (bias*scale + shift)
    outputs: (R, Cp) f32 parity planes for (dy,dx) in {(0,0),(0,1),(1,0),(1,1)}
    """
    rows, cin = xm_ref.shape
    xm_b = xm_ref[...]                                   # (R, Cin) bf16
    # Build shifted views at 32-bit sublane granularity, feed the MXU in bf16.
    xm = xm_b.astype(jnp.float32)
    xh = xh_ref[...].astype(jnp.float32)                 # (Wp, Cin)
    tail = jnp.zeros((8, cin), jnp.float32)
    xext = jnp.concatenate([xm, xh, tail], axis=0)       # (R + Wp + 8, Cin)
    xs = xext[1:1 + rows + wp]                           # shifted by one column (j+1)
    x00 = xm_b                                           # x[i,   j]
    x01 = xs[:rows].astype(jnp.bfloat16)                 # x[i,   j+1]  (0 past right edge)
    x10 = xext[wp:wp + rows].astype(jnp.bfloat16)        # x[i+1, j]    (0 past bottom edge)
    x11 = xs[wp:wp + rows].astype(jnp.bfloat16)          # x[i+1, j+1]

    s = s_ref[...]
    t = t_ref[...]

    def tap(a, kh, kw):
        return jnp.dot(a, w_ref[kh * 3 + kw], preferred_element_type=jnp.float32)

    def emit(o_ref, acc):
        o_ref[...] = jnp.maximum(acc * s + t, 0.0)

    # out[2i,   2j  ] = x00 @ W[1,1]
    # out[2i,   2j+1] = x00 @ W[1,2] + x01 @ W[1,0]
    # out[2i+1, 2j  ] = x00 @ W[2,1] + x10 @ W[0,1]
    # out[2i+1, 2j+1] = x00 @ W[2,2] + x01 @ W[2,0] + x10 @ W[0,2] + x11 @ W[0,0]
    emit(ee_ref, tap(x00, 1, 1))
    emit(eo_ref, tap(x00, 1, 2) + tap(x01, 1, 0))
    emit(oe_ref, tap(x00, 2, 1) + tap(x10, 0, 1))
    emit(oo_ref, tap(x00, 2, 2) + tap(x01, 2, 0) + tap(x10, 0, 2) + tap(x11, 0, 0))


# ----------------------------------------------------------------------------
# Jitted wrapper (single executable: pad/cast + one pallas_call + interleave)
# ----------------------------------------------------------------------------
@functools.partial(jax.jit, static_argnames=("block_rows",))
def upsampler_block_forward(x, params, *, block_rows=512):
    """UpsamplerBlock forward.  x: (N, H, W, Cin) f32, NHWC.  Returns (N, 2H, 2W, Cout)."""
    n, h, w, cin = x.shape
    wct = params["w"]                       # (Cin, Cout, 3, 3)  PyTorch ConvTranspose layout
    cout = wct.shape[1]
    eps = 1e-3                              # nn.BatchNorm2d(noutput, eps=0.001)

    # Fold BatchNorm running stats (+ conv bias) into a per-channel affine.
    bn_scale = params["gamma"] * lax.rsqrt(params["var"] + eps)
    bn_shift = params["beta"] - params["mean"] * bn_scale
    shift = params["b"] * bn_scale + bn_shift

    cp = _round_up(cout, 128)               # lane-dense output channels (unmasked vst)
    wp = _round_up(w + 1, 8)                # >= W+1 zero-padded columns, sublane-aligned

    # Tap matrices (kh*3+kw, Cin, Cp), zero-padded channels, bf16 for the MXU.
    w_taps = jnp.transpose(wct, (2, 3, 0, 1)).reshape(9, cin, cout)
    w_taps = jnp.pad(w_taps, ((0, 0), (0, 0), (0, cp - cout))).astype(jnp.bfloat16)
    scale_p = jnp.pad(bn_scale, (0, cp - cout)).reshape(1, cp).astype(jnp.float32)
    shift_p = jnp.pad(shift, (0, cp - cout)).reshape(1, cp).astype(jnp.float32)

    # One zero row at the bottom, zero columns on the right; flatten (H+1, Wp) rows.
    xpad = jnp.pad(x, ((0, 0), (0, 1), (0, wp - w), (0, 0)))
    xflat = xpad.reshape(n, (h + 1) * wp, cin).astype(jnp.bfloat16)

    th = _largest_divisor_leq(h, max(1, block_rows // wp))   # input rows per tile
    rows = th * wp
    grid = (n, h // th)

    kern = functools.partial(_upsampler_kernel, wp=wp)
    out_sds = jax.ShapeDtypeStruct((n, h * wp, cp), jnp.float32)
    parities = pl.pallas_call(
        kern,
        grid=grid,
        in_specs=[
            pl.BlockSpec((None, rows, cin), lambda b, i: (b, i, 0)),           # tile
            pl.BlockSpec((None, wp, cin), lambda b, i: (b, (i + 1) * th, 0)),  # halo row
            pl.BlockSpec((9, cin, cp), lambda b, i: (0, 0, 0)),                # taps
            pl.BlockSpec((1, cp), lambda b, i: (0, 0)),                        # scale
            pl.BlockSpec((1, cp), lambda b, i: (0, 0)),                        # shift
        ],
        out_specs=[pl.BlockSpec((None, rows, cp), lambda b, i: (b, i, 0))
                   for _ in range(4)],
        out_shape=[out_sds] * 4,
        compiler_params=pltpu.CompilerParams(
            dimension_semantics=("parallel", "parallel")),
    )(xflat, xflat, w_taps, scale_p, shift_p)

    # Drop padded columns/channels and interleave the four parity planes into
    # out[:, 2i+dy, 2j+dx, :].  XLA fuses the slicing into this single copy.
    ee, eo, oe, oo = (p.reshape(n, h, wp, cp)[:, :, :w, :cout] for p in parities)
    rows_even = jnp.stack([ee, eo], axis=3).reshape(n, h, 2 * w, cout)
    rows_odd = jnp.stack([oe, oo], axis=3).reshape(n, h, 2 * w, cout)
    return jnp.stack([rows_even, rows_odd], axis=2).reshape(n, 2 * h, 2 * w, cout)


# ----------------------------------------------------------------------------
# Pure-XLA reference: ConvTranspose2d == lhs-dilated conv with the flipped kernel.
# Same bf16 operands as the Pallas path, so only f32 accumulation order differs.
# ----------------------------------------------------------------------------
def _reference_forward(x, params, eps=1e-3):
    wct = params["w"]
    rhs = jnp.transpose(jnp.flip(wct, axis=(2, 3)), (2, 3, 0, 1))   # HWIO
    y = lax.conv_general_dilated(
        x.astype(jnp.bfloat16), rhs.astype(jnp.bfloat16),
        window_strides=(1, 1),
        padding=((1, 2), (1, 2)),        # (k-1-p, k-1-p+output_padding) with k=3, p=1, op=1
        lhs_dilation=(2, 2),
        dimension_numbers=("NHWC", "HWIO", "NHWC"),
        preferred_element_type=jnp.float32)
    s = params["gamma"] * lax.rsqrt(params["var"] + eps)
    t = params["beta"] - params["mean"] * s
    return jnp.maximum((y + params["b"]) * s + t, 0.0)


# ----------------------------------------------------------------------------
if __name__ == "__main__":
    key = jax.random.PRNGKey(0)
    kx, kw, kb, kg, kbe, km, kv = jax.random.split(key, 7)

    # Small deterministic problem: N=2, H=W=16, Cin=16 -> Cout=8 (NHWC).
    n, h, w, cin, cout = 2, 16, 16, 16, 8
    x = jax.random.normal(kx, (n, h, w, cin), jnp.float32)
    params = {
        "w": 0.1 * jax.random.normal(kw, (cin, cout, 3, 3), jnp.float32),
        "b": 0.05 * jax.random.normal(kb, (cout,), jnp.float32),
        "gamma": 1.0 + 0.1 * jax.random.normal(kg, (cout,), jnp.float32),
        "beta": 0.1 * jax.random.normal(kbe, (cout,), jnp.float32),
        "mean": 0.1 * jax.random.normal(km, (cout,), jnp.float32),
        "var": 1.0 + 0.1 * jax.random.uniform(kv, (cout,), jnp.float32),
    }

    out = jax.block_until_ready(upsampler_block_forward(x, params))
    assert out.shape == (n, 2 * h, 2 * w, cout), out.shape

    ref = jax.block_until_ready(jax.jit(_reference_forward)(x, params))
    # Both paths use identical bf16 multiplicands with f32 accumulation, so the
    # residual difference is accumulation order only (~1e-6); 1e-3 is ample margin.
    np.testing.assert_allclose(np.asarray(out), np.asarray(ref),
                               rtol=1e-3, atol=1e-3)
    print("KERNEL_OK")
</pallas_src>

<mosaic_0001>
module attributes {stable_mosaic.version = 11 : i64} {
  func.func @_upsampler_kernel(%arg0: i32, %arg1: i32, %arg2: memref<1x384x16xbf16, #tpu.memory_space<vmem>>, %arg3: memref<1x24x16xbf16, #tpu.memory_space<vmem>>, %arg4: memref<9x16x128xbf16, #tpu.memory_space<vmem>>, %arg5: memref<1x128xf32, #tpu.memory_space<vmem>>, %arg6: memref<1x128xf32, #tpu.memory_space<vmem>>, %arg7: memref<1x384x128xf32, #tpu.memory_space<vmem>>, %arg8: memref<1x384x128xf32, #tpu.memory_space<vmem>>, %arg9: memref<1x384x128xf32, #tpu.memory_space<vmem>>, %arg10: memref<1x384x128xf32, #tpu.memory_space<vmem>>) attributes {dimension_semantics = [#tpu.dimension_semantics<parallel>, #tpu.dimension_semantics<parallel>], iteration_bounds = array<i64: 2, 1>, scalar_prefetch = 0 : i64, scratch_operands = 0 : i64, tpu.core_type = #tpu.core_type<tc>, window_params = [{transform_indices = @transform_0, window_bounds = array<i64: 1, 384, 16>}, {transform_indices = @transform_1, window_bounds = array<i64: 1, 24, 16>}, {pipeline_mode = #tpu.pipeline_mode<synchronous>, transform_indices = @transform_2, window_bounds = array<i64: 9, 16, 128>}, {pipeline_mode = #tpu.pipeline_mode<synchronous>, transform_indices = @transform_3, window_bounds = array<i64: 1, 128>}, {pipeline_mode = #tpu.pipeline_mode<synchronous>, transform_indices = @transform_4, window_bounds = array<i64: 1, 128>}, {transform_indices = @transform_5, window_bounds = array<i64: 1, 384, 128>}, {transform_indices = @transform_6, window_bounds = array<i64: 1, 384, 128>}, {transform_indices = @transform_7, window_bounds = array<i64: 1, 384, 128>}, {transform_indices = @transform_8, window_bounds = array<i64: 1, 384, 128>}]} {
    %c0 = arith.constant 0 : index
    %c0_0 = arith.constant 0 : index
    %c0_1 = arith.constant 0 : index
    %0 = vector.load %arg2[%c0, %c0_0, %c0_1] : memref<1x384x16xbf16, #tpu.memory_space<vmem>>, vector<1x384x16xbf16>
    %1 = vector.shape_cast %0 : vector<1x384x16xbf16> to vector<384x16xbf16>
    %2 = arith.extf %1 : vector<384x16xbf16> to vector<384x16xf32>
    %c0_2 = arith.constant 0 : index
    %c0_3 = arith.constant 0 : index
    %c0_4 = arith.constant 0 : index
    %3 = vector.load %arg3[%c0_2, %c0_3, %c0_4] : memref<1x24x16xbf16, #tpu.memory_space<vmem>>, vector<1x24x16xbf16>
    %4 = vector.shape_cast %3 : vector<1x24x16xbf16> to vector<24x16xbf16>
    %5 = arith.extf %4 : vector<24x16xbf16> to vector<24x16xf32>
    %cst = arith.constant 0.000000e+00 : f32
    %6 = vector.broadcast %cst : f32 to vector<8x16xf32>
    %7 = tpu.concatenate %2, %5, %6 in 0 : vector<384x16xf32>, vector<24x16xf32>, vector<8x16xf32> -> vector<416x16xf32>
    %8 = vector.extract_strided_slice %7 {offsets = [1, 0], sizes = [408, 16], strides = [1, 1]} : vector<416x16xf32> to vector<408x16xf32>
    %9 = vector.extract_strided_slice %8 {offsets = [0, 0], sizes = [384, 16], strides = [1, 1]} : vector<408x16xf32> to vector<384x16xf32>
    %10 = arith.truncf %9 : vector<384x16xf32> to vector<384x16xbf16>
    %11 = vector.extract_strided_slice %7 {offsets = [24, 0], sizes = [384, 16], strides = [1, 1]} : vector<416x16xf32> to vector<384x16xf32>
    %12 = arith.truncf %11 : vector<384x16xf32> to vector<384x16xbf16>
    %13 = vector.extract_strided_slice %8 {offsets = [24, 0], sizes = [384, 16], strides = [1, 1]} : vector<408x16xf32> to vector<384x16xf32>
    %14 = arith.truncf %13 : vector<384x16xf32> to vector<384x16xbf16>
    %c0_5 = arith.constant 0 : index
    %c0_6 = arith.constant 0 : index
    %15 = vector.load %arg5[%c0_5, %c0_6] : memref<1x128xf32, #tpu.memory_space<vmem>>, vector<1x128xf32>
    %c0_7 = arith.constant 0 : index
    %c0_8 = arith.constant 0 : index
    %16 = vector.load %arg6[%c0_7, %c0_8] : memref<1x128xf32, #tpu.memory_space<vmem>>, vector<1x128xf32>
    %c4 = arith.constant 4 : index
    %c0_9 = arith.constant 0 : index
    %c0_10 = arith.constant 0 : index
    %17 = vector.load %arg4[%c4, %c0_9, %c0_10] : memref<9x16x128xbf16, #tpu.memory_space<vmem>>, vector<1x16x128xbf16>
    %18 = vector.shape_cast %17 : vector<1x16x128xbf16> to vector<16x128xbf16>
    %cst_11 = arith.constant dense<0.000000e+00> : vector<384x128xf32>
    %19 = tpu.matmul %1, %18, %cst_11 {dimension_numbers = #tpu.dot_dimension_numbers<[1], [0], [0], [1], [0, 0, 1, 1], [], []>} : vector<384x16xbf16>, vector<16x128xbf16>, vector<384x128xf32> -> vector<384x128xf32>
    %20 = vector.broadcast %15 : vector<1x128xf32> to vector<384x128xf32>
    %21 = arith.mulf %19, %20 : vector<384x128xf32>
    %22 = vector.broadcast %16 : vector<1x128xf32> to vector<384x128xf32>
    %23 = arith.addf %21, %22 : vector<384x128xf32>
    %cst_12 = arith.constant 0.000000e+00 : f32
    %24 = vector.broadcast %cst_12 : f32 to vector<384x128xf32>
    %25 = arith.maximumf %23, %24 : vector<384x128xf32>
    %c0_13 = arith.constant 0 : index
    %c0_14 = arith.constant 0 : index
    %c0_15 = arith.constant 0 : index
    %26 = vector.load %arg7[%c0_13, %c0_14, %c0_15] : memref<1x384x128xf32, #tpu.memory_space<vmem>>, vector<1x384x128xf32>
    %27 = vector.shape_cast %26 : vector<1x384x128xf32> to vector<384x128xf32>
    %28 = vector.shape_cast %25 : vector<384x128xf32> to vector<1x384x128xf32>
    tpu.vector_store %arg7[%c0_13, %c0_14, %c0_15], %28 {strides = array<i32>} : memref<1x384x128xf32, #tpu.memory_space<vmem>>, vector<1x384x128xf32>,
    %c5 = arith.constant 5 : index
    %c0_16 = arith.constant 0 : index
    %c0_17 = arith.constant 0 : index
    %29 = vector.load %arg4[%c5, %c0_16, %c0_17] : memref<9x16x128xbf16, #tpu.memory_space<vmem>>, vector<1x16x128xbf16>
    %30 = vector.shape_cast %29 : vector<1x16x128xbf16> to vector<16x128xbf16>
    %cst_18 = arith.constant dense<0.000000e+00> : vector<384x128xf32>
    %31 = tpu.matmul %1, %30, %cst_18 {dimension_numbers = #tpu.dot_dimension_numbers<[1], [0], [0], [1], [0, 0, 1, 1], [], []>} : vector<384x16xbf16>, vector<16x128xbf16>, vector<384x128xf32> -> vector<384x128xf32>
    %c3 = arith.constant 3 : index
    %c0_19 = arith.constant 0 : index
    %c0_20 = arith.constant 0 : index
    %32 = vector.load %arg4[%c3, %c0_19, %c0_20] : memref<9x16x128xbf16, #tpu.memory_space<vmem>>, vector<1x16x128xbf16>
    %33 = vector.shape_cast %32 : vector<1x16x128xbf16> to vector<16x128xbf16>
    %cst_21 = arith.constant dense<0.000000e+00> : vector<384x128xf32>
    %34 = tpu.matmul %10, %33, %cst_21 {dimension_numbers = #tpu.dot_dimension_numbers<[1], [0], [0], [1], [0, 0, 1, 1], [], []>} : vector<384x16xbf16>, vector<16x128xbf16>, vector<384x128xf32> -> vector<384x128xf32>
    %35 = arith.addf %31, %34 : vector<384x128xf32>
    %36 = vector.broadcast %15 : vector<1x128xf32> to vector<384x128xf32>
    %37 = arith.mulf %35, %36 : vector<384x128xf32>
    %38 = vector.broadcast %16 : vector<1x128xf32> to vector<384x128xf32>
    %39 = arith.addf %37, %38 : vector<384x128xf32>
    %cst_22 = arith.constant 0.000000e+00 : f32
    %40 = vector.broadcast %cst_22 : f32 to vector<384x128xf32>
    %41 = arith.maximumf %39, %40 : vector<384x128xf32>
    %c0_23 = arith.constant 0 : index
    %c0_24 = arith.constant 0 : index
    %c0_25 = arith.constant 0 : index
    %42 = vector.load %arg8[%c0_23, %c0_24, %c0_25] : memref<1x384x128xf32, #tpu.memory_space<vmem>>, vector<1x384x128xf32>
    %43 = vector.shape_cast %42 : vector<1x384x128xf32> to vector<384x128xf32>
    %44 = vector.shape_cast %41 : vector<384x128xf32> to vector<1x384x128xf32>
    tpu.vector_store %arg8[%c0_23, %c0_24, %c0_25], %44 {strides = array<i32>} : memref<1x384x128xf32, #tpu.memory_space<vmem>>, vector<1x384x128xf32>,
    %c7 = arith.constant 7 : index
    %c0_26 = arith.constant 0 : index
    %c0_27 = arith.constant 0 : index
    %45 = vector.load %arg4[%c7, %c0_26, %c0_27] : memref<9x16x128xbf16, #tpu.memory_space<vmem>>, vector<1x16x128xbf16>
    %46 = vector.shape_cast %45 : vector<1x16x128xbf16> to vector<16x128xbf16>
    %cst_28 = arith.constant dense<0.000000e+00> : vector<384x128xf32>
    %47 = tpu.matmul %1, %46, %cst_28 {dimension_numbers = #tpu.dot_dimension_numbers<[1], [0], [0], [1], [0, 0, 1, 1], [], []>} : vector<384x16xbf16>, vector<16x128xbf16>, vector<384x128xf32> -> vector<384x128xf32>
    %c1 = arith.constant 1 : index
    %c0_29 = arith.constant 0 : index
    %c0_30 = arith.constant 0 : index
    %48 = vector.load %arg4[%c1, %c0_29, %c0_30] : memref<9x16x128xbf16, #tpu.memory_space<vmem>>, vector<1x16x128xbf16>
    %49 = vector.shape_cast %48 : vector<1x16x128xbf16> to vector<16x128xbf16>
    %cst_31 = arith.constant dense<0.000000e+00> : vector<384x128xf32>
    %50 = tpu.matmul %12, %49, %cst_31 {dimension_numbers = #tpu.dot_dimension_numbers<[1], [0], [0], [1], [0, 0, 1, 1], [], []>} : vector<384x16xbf16>, vector<16x128xbf16>, vector<384x128xf32> -> vector<384x128xf32>
    %51 = arith.addf %47, %50 : vector<384x128xf32>
    %52 = vector.broadcast %15 : vector<1x128xf32> to vector<384x128xf32>
    %53 = arith.mulf %51, %52 : vector<384x128xf32>
    %54 = vector.broadcast %16 : vector<1x128xf32> to vector<384x128xf32>
    %55 = arith.addf %53, %54 : vector<384x128xf32>
    %cst_32 = arith.constant 0.000000e+00 : f32
    %56 = vector.broadcast %cst_32 : f32 to vector<384x128xf32>
    %57 = arith.maximumf %55, %56 : vector<384x128xf32>
    %c0_33 = arith.constant 0 : index
    %c0_34 = arith.constant 0 : index
    %c0_35 = arith.constant 0 : index
    %58 = vector.load %arg9[%c0_33, %c0_34, %c0_35] : memref<1x384x128xf32, #tpu.memory_space<vmem>>, vector<1x384x128xf32>
    %59 = vector.shape_cast %58 : vector<1x384x128xf32> to vector<384x128xf32>
    %60 = vector.shape_cast %57 : vector<384x128xf32> to vector<1x384x128xf32>
    tpu.vector_store %arg9[%c0_33, %c0_34, %c0_35], %60 {strides = array<i32>} : memref<1x384x128xf32, #tpu.memory_space<vmem>>, vector<1x384x128xf32>,
    %c8 = arith.constant 8 : index
    %c0_36 = arith.constant 0 : index
    %c0_37 = arith.constant 0 : index
    %61 = vector.load %arg4[%c8, %c0_36, %c0_37] : memref<9x16x128xbf16, #tpu.memory_space<vmem>>, vector<1x16x128xbf16>
    %62 = vector.shape_cast %61 : vector<1x16x128xbf16> to vector<16x128xbf16>
    %cst_38 = arith.constant dense<0.000000e+00> : vector<384x128xf32>
    %63 = tpu.matmul %1, %62, %cst_38 {dimension_numbers = #tpu.dot_dimension_numbers<[1], [0], [0], [1], [0, 0, 1, 1], [], []>} : vector<384x16xbf16>, vector<16x128xbf16>, vector<384x128xf32> -> vector<384x128xf32>
    %c6 = arith.constant 6 : index
    %c0_39 = arith.constant 0 : index
    %c0_40 = arith.constant 0 : index
    %64 = vector.load %arg4[%c6, %c0_39, %c0_40] : memref<9x16x128xbf16, #tpu.memory_space<vmem>>, vector<1x16x128xbf16>
    %65 = vector.shape_cast %64 : vector<1x16x128xbf16> to vector<16x128xbf16>
    %cst_41 = arith.constant dense<0.000000e+00> : vector<384x128xf32>
    %66 = tpu.matmul %10, %65, %cst_41 {dimension_numbers = #tpu.dot_dimension_numbers<[1], [0], [0], [1], [0, 0, 1, 1], [], []>} : vector<384x16xbf16>, vector<16x128xbf16>, vector<384x128xf32> -> vector<384x128xf32>
    %67 = arith.addf %63, %66 : vector<384x128xf32>
    %c2 = arith.constant 2 : index
    %c0_42 = arith.constant 0 : index
    %c0_43 = arith.constant 0 : index
    %68 = vector.load %arg4[%c2, %c0_42, %c0_43] : memref<9x16x128xbf16, #tpu.memory_space<vmem>>, vector<1x16x128xbf16>
    %69 = vector.shape_cast %68 : vector<1x16x128xbf16> to vector<16x128xbf16>
    %cst_44 = arith.constant dense<0.000000e+00> : vector<384x128xf32>
    %70 = tpu.matmul %12, %69, %cst_44 {dimension_numbers = #tpu.dot_dimension_numbers<[1], [0], [0], [1], [0, 0, 1, 1], [], []>} : vector<384x16xbf16>, vector<16x128xbf16>, vector<384x128xf32> -> vector<384x128xf32>
    %71 = arith.addf %67, %70 : vector<384x128xf32>
    %c0_45 = arith.constant 0 : index
    %c0_46 = arith.constant 0 : index
    %c0_47 = arith.constant 0 : index
    %72 = vector.load %arg4[%c0_45, %c0_46, %c0_47] : memref<9x16x128xbf16, #tpu.memory_space<vmem>>, vector<1x16x128xbf16>
    %73 = vector.shape_cast %72 : vector<1x16x128xbf16> to vector<16x128xbf16>
    %cst_48 = arith.constant dense<0.000000e+00> : vector<384x128xf32>
    %74 = tpu.matmul %14, %73, %cst_48 {dimension_numbers = #tpu.dot_dimension_numbers<[1], [0], [0], [1], [0, 0, 1, 1], [], []>} : vector<384x16xbf16>, vector<16x128xbf16>, vector<384x128xf32> -> vector<384x128xf32>
    %75 = arith.addf %71, %74 : vector<384x128xf32>
    %76 = vector.broadcast %15 : vector<1x128xf32> to vector<384x128xf32>
    %77 = arith.mulf %75, %76 : vector<384x128xf32>
    %78 = vector.broadcast %16 : vector<1x128xf32> to vector<384x128xf32>
    %79 = arith.addf %77, %78 : vector<384x128xf32>
    %cst_49 = arith.constant 0.000000e+00 : f32
    %80 = vector.broadcast %cst_49 : f32 to vector<384x128xf32>
    %81 = arith.maximumf %79, %80 : vector<384x128xf32>
    %c0_50 = arith.constant 0 : index
    %c0_51 = arith.constant 0 : index
    %c0_52 = arith.constant 0 : index
    %82 = vector.load %arg10[%c0_50, %c0_51, %c0_52] : memref<1x384x128xf32, #tpu.memory_space<vmem>>, vector<1x384x128xf32>
    %83 = vector.shape_cast %82 : vector<1x384x128xf32> to vector<384x128xf32>
    %84 = vector.shape_cast %81 : vector<384x128xf32> to vector<1x384x128xf32>
    tpu.vector_store %arg10[%c0_50, %c0_51, %c0_52], %84 {strides = array<i32>} : memref<1x384x128xf32, #tpu.memory_space<vmem>>, vector<1x384x128xf32>,
    return
  }
  func.func @transform_0(%arg0: i32, %arg1: i32) -> (i32, i32, i32) {
    %c0_i32 = arith.constant 0 : i32
    %c0_i32_0 = arith.constant 0 : i32
    return %arg0, %arg1, %c0_i32 : i32, i32, i32
  }
  func.func @transform_1(%arg0: i32, %arg1: i32) -> (i32, i32, i32) {
    %c1_i32 = arith.constant 1 : i32
    %0 = arith.addi %arg1, %c1_i32 : i32
    %c16_i32 = arith.constant 16 : i32
    %1 = arith.muli %0, %c16_i32 : i32
    %c0_i32 = arith.constant 0 : i32
    %c0_i32_0 = arith.constant 0 : i32
    return %arg0, %1, %c0_i32 : i32, i32, i32
  }
  func.func @transform_2(%arg0: i32, %arg1: i32) -> (i32, i32, i32) {
    %c0_i32 = arith.constant 0 : i32
    %c0_i32_0 = arith.constant 0 : i32
    %c0_i32_1 = arith.constant 0 : i32
    %c0_i32_2 = arith.constant 0 : i32
    return %c0_i32, %c0_i32_0, %c0_i32_1 : i32, i32, i32
  }
  func.func @transform_3(%arg0: i32, %arg1: i32) -> (i32, i32) {
    %c0_i32 = arith.constant 0 : i32
    %c0_i32_0 = arith.constant 0 : i32
    %c0_i32_1 = arith.constant 0 : i32
    return %c0_i32, %c0_i32_0 : i32, i32
  }
  func.func @transform_4(%arg0: i32, %arg1: i32) -> (i32, i32) {
    %c0_i32 = arith.constant 0 : i32
    %c0_i32_0 = arith.constant 0 : i32
    %c0_i32_1 = arith.constant 0 : i32
    return %c0_i32, %c0_i32_0 : i32, i32
  }
  func.func @transform_5(%arg0: i32, %arg1: i32) -> (i32, i32, i32) {
    %c0_i32 = arith.constant 0 : i32
    %c0_i32_0 = arith.constant 0 : i32
    return %arg0, %arg1, %c0_i32 : i32, i32, i32
  }
  func.func @transform_6(%arg0: i32, %arg1: i32) -> (i32, i32, i32) {
    %c0_i32 = arith.constant 0 : i32
    %c0_i32_0 = arith.constant 0 : i32
    return %arg0, %arg1, %c0_i32 : i32, i32, i32
  }
  func.func @transform_7(%arg0: i32, %arg1: i32) -> (i32, i32, i32) {
    %c0_i32 = arith.constant 0 : i32
    %c0_i32_0 = arith.constant 0 : i32
    return %arg0, %arg1, %c0_i32 : i32, i32, i32
  }
  func.func @transform_8(%arg0: i32, %arg1: i32) -> (i32, i32, i32) {
    %c0_i32 = arith.constant 0 : i32
    %c0_i32_0 = arith.constant 0 : i32
    return %arg0, %arg1, %c0_i32 : i32, i32, i32
  }
}

</mosaic_0001>

<bundles_post_ra>
// kernel: upsampler_block_forward.1
= control target key start
LH: loop header
LB: loop body
LE: loop exit
PB: predicated region body
PF: predicated region fallthrough
CT: control target
= control target key end

     0   :  { %s6082_s27 = smov 0   ;;  %s6084_s28 = smov 0   ;;  %s7802_s0 = inlined_call_operand.vmem [shape: bf16[2,408,16], index: 0, kind: input, shape index: {}, may-alias: {0,1}]   ;;  %s7803_s1 = inlined_call_operand.vmem [shape: bf16[2,408,16], index: 1, kind: input, shape index: {}, may-alias: {0,1}]   ;;  %s7804_s2 = inlined_call_operand.vmem [shape: bf16[9,16,128], index: 2, kind: input, shape index: {}]   ;;  %s7805_s3 = inlined_call_operand.vmem [shape: f32[1,128], index: 3, kind: input, shape index: {}]   ;;  %s7806_s4 = inlined_call_operand.vmem [shape: f32[1,128], index: 4, kind: input, shape index: {}]   ;;  %s7807_s5 = inlined_call_operand.vmem [shape: f32[2,384,128], index: 5, kind: output, shape index: {0}]   ;;  %s7808_s6 = inlined_call_operand.vmem [shape: f32[2,384,128], index: 6, kind: output, shape index: {1}]   ;;  %s7809_s7 = inlined_call_operand.vmem [shape: f32[2,384,128], index: 7, kind: output, shape index: {2}]   ;;  %s7810_s8 = inlined_call_operand.vmem [shape: f32[2,384,128], index: 8, kind: output, shape index: {3}]  }
   0x1   :  { %s6086_s29 = smov 0  }
   0x2 LB: > { %s31_s30 = sadd.s32 1, %s6030_s28  ;;  %p4658_p0 = scmp.ge.s32.totalorder %s6034_s29, 1  ;;  %s6034_s29 = sphi %s6086_s29, %s19_s29   ;;  %s6030_s28 = sphi %s6084_s28, %s7940_s28   ;;  %s6026_s27 = sphi %s6082_s27, %s7939_s27  }
   0x3   : > { %p33_p1 = scmp.ge.s32.totalorder %s31_s30, 2  ;;  %p329_p2 = scmp.lt.s32.totalorder %s6034_s29, 3 }
   0x5   : > { %s7942_s30 = smov (%p33_p1, %s31_s30), 0  ;;  %p330_p3 = pnand %p4658_p0, %p329_p2 }
   0x7   : > { %333 = sbr.rel (%p330_p3) target bundleno = 671 (0x29f), region = 40 }
   0xe   : > { %v5931_v0 = vld [vmem:[%s7804_s2 + $0x20] sm:$0xff]   ;;  %p418_p4 = scmp.lt.s32.totalorder %s6026_s27, 1  ;;  %v6106_v1 = vld [vmem:[%s7804_s2 + $0x28] sm:$0xff]   ;;  %v5934_v2 = vld [vmem:[%s7804_s2 + $0x18] sm:$0xff]   ;;  %vm769_vm0 = vcmask 130048  }
   0xf   : > { %5210 = vmatprep.subr.bf16.mxu0 %v5931_v0  ;;  %5660 = vmatprep.subr.bf16.mxu1 %v6106_v1  ;;  %v5936_v3 = vld [vmem:[%s7804_s2 + $0x30] sm:$0xff]   ;;  %v6177_v19 = vld [vmem:[%s7804_s2 + $0x40] sm:$0xff]   ;;  %vm1277_vm1 = vsmask.f32 7424 }
  0x10   : > { %s7944_s27 = smov (!%p418_p4, %s6026_s27), 1  ;;  %5211 = vmatpush3.bf16.msra.mxu0 %v5931_v0  ;;  %5661 = vmatpush3.bf16.msra.mxu1 %v6106_v1 }
  0x11   : > { %s5902_s17 = smul.u32 204, %s7944_s27  ;;  %5260 = vmatprep.subr.bf16.mxu0 %v5934_v2  ;;  %5460 = vmatprep.subr.bf16.mxu1 %v5936_v3 }
  0x12   : > { %s6697_s19 = smul.u32 384, %s7944_s27 }
  0x13   : > { %s6124_s20 = scalar_lea.vmem %s7802_s0, %s5902_s17  ;;  %s4984_s23 = sadd.s32 192, %s5902_s17 }
  0x14   : > { %v6127_v4 = vld [vmem:[%s6124_s20] sm:$0xff]   ;;  %v488_v7 = vld [vmem:[%s6124_s20 + $0x8] sm:$0xf]  ;;  %v6143_v9 = vld [vmem:[%s6124_s20 + $0xc] sm:$0xf]  ;;  %s6264_s26 = scalar_lea.vmem %s7803_s1, %s4984_s23  ;;  %s6725_s24 = scalar_lea.vmem %s7807_s5, %s6697_s19 }
  0x15   : > { %v6130_v5 = vld [vmem:[%s6124_s20 + $0x60] sm:$0xf]  ;;  %v6133_v6 = vld [vmem:[%s6124_s20 + $0x64] sm:$0xf]  ;;  %5212 = vmatprep.mubr.msk.bf16.mxu0 %vm769_vm0, %v6127_v4  ;;  %v6146_v10 = vld [vmem:[%s6124_s20 + $0x68] sm:$0xf]  ;;  %v6152_v12 = vcombine.low %v488_v7, %v6143_v9  ;;  %s7495_s15 = scalar_lea.vmem %s7809_s7, %s6697_s19  ;;  %s7501_s18 = scalar_lea.vmem %s7810_s8, %s6697_s19 }
  0x16   : > { %7840 = vst [vmem:[#allocation2_spill] sm:$0xff] %v6130_v5  ;;  %7841 = vst [vmem:[#allocation3_spill] sm:$0xff] %v6133_v6  ;;  %v6140_v8 = vcombine.low %v6130_v5, %v6133_v6  ;;  %v6149_v11 = vld [vmem:[%s6124_s20 + $0x6c] sm:$0xf]  ;;  %v6159_v14 = vld [vmem:[%s6124_s20 + $0x10] sm:$0xf] }
  0x17   : > { %7843 = vst [vmem:[#allocation5_spill] sm:$0xff] %v6146_v10  ;;  %7844 = vst [vmem:[#allocation6_spill] sm:$0xff] %v6149_v11  ;;  %v6156_v13 = vcombine.low %v6146_v10, %v6149_v11  ;;  %v6162_v15 = vld [vmem:[%s6124_s20 + $0x14] sm:$0xf]  ;;  %v6165_v16 = vld [vmem:[%s6124_s20 + $0x70] sm:$0xf]  ;;  %5213 = vmatmul.mubr.msk.bf16.vlgmr.msra.gmra.mrb[0].mxu0 %vm769_vm0, %v6152_v12 }
  0x18   : > { %7842 = vst [vmem:[#allocation4_spill] sm:$0xff] %v6140_v8  ;;  %7846 = vst [vmem:[#allocation8_spill] sm:$0xff] %v6165_v16  ;;  %5336 = vmatprep.mubr.msk.bf16.mxu1 %vm769_vm0, %v6140_v8  ;;  %v6171_v17 = vcombine.low %v6159_v14, %v6162_v15  ;;  %v515_v18 = vld [vmem:[%s6124_s20 + $0x74] sm:$0xf]  ;;  %v6187_v21 = vld [vmem:[%s6124_s20 + $0x18] sm:$0xf]  ;;  %5261 = vmatpush3.bf16.msra.mxu0 %v5934_v2 }
  0x19   : > { %7845 = vst [vmem:[#allocation7_spill] sm:$0xff] %v6156_v13  ;;  %5337 = vmatmul.mubr.msk.bf16.vlgmr.msra.gmra.mrb[0].mxu1 %vm769_vm0, %v6156_v13  ;;  %v6184_v20 = vcombine.low %v6165_v16, %v515_v18  ;;  %v6190_v22 = vld [vmem:[%s6124_s20 + $0x1c] sm:$0xf]  ;;  %v516_v23 = vld [vmem:[%s6124_s20 + $0x78] sm:$0xf]  ;;  %5310 = vmatprep.subr.bf16.mxu0 %v6106_v1  ;;  %v1281_v2 = vshll.u32 %v6127_v4, 16 }
  0x1a   : > { %5461 = vmatpush3.bf16.msra.mxu1 %v5936_v3  ;;  %v517_v24 = vld [vmem:[%s6124_s20 + $0x7c] sm:$0xf]  ;;  %v6195_v25 = vld [vmem:[%s6124_s20 + $0x20] sm:$0xf]  ;;  %5216 = vmatprep.mubr.msk.bf16.mxu0 %vm769_vm0, %v6171_v17  ;;  %v6202_v26 = vld [vmem:[%s6124_s20 + $0x24] sm:$0xf]  ;;  %v6210_v29 = vcombine.low %v6187_v21, %v6190_v22 }
  0x1b   : > { %7847 = vst [vmem:[#allocation9_spill] sm:$0xff] %v6184_v20  ;;  %5340 = vmatprep.mubr.msk.bf16.mxu1 %vm769_vm0, %v6184_v20  ;;  %v518_v27 = vld [vmem:[%s6124_s20 + $0x80] sm:$0xf]  ;;  %v519_v28 = vld [vmem:[%s6124_s20 + $0x84] sm:$0xf]  ;;  %5510 = vmatprep.subr.bf16.mxu1 %v6177_v19  ;;  %v6212_v30 = vcombine.low %v516_v23, %v517_v24  ;;  %v6216_v31 = vcombine.low %v6195_v25, %v6202_v26  ;;  %v1279_v24 = vshrl.u32 %v6127_v4, 16 }
  0x1c   : > { %v6218_v32 = vcombine.low %v518_v27, %v519_v28  ;;  %v6225_v33 = vld [vmem:[%s6124_s20 + $0x28] sm:$0xf]  ;;  %v6228_v34 = vld [vmem:[%s6124_s20 + $0x2c] sm:$0xf]  ;;  %v6237_v37 = vld [vmem:[%s6124_s20 + $0x30] sm:$0xf] }
  0x1d   : > { %7848 = vst [vmem:[#allocation10_spill] sm:$0xff] %v6212_v30  ;;  %v520_v35 = vld [vmem:[%s6124_s20 + $0x88] sm:$0xf]  ;;  %v521_v36 = vld [vmem:[%s6124_s20 + $0x8c] sm:$0xf]  ;;  %v6246_v41 = vcombine.low %v6225_v33, %v6228_v34  ;;  %v1283_v27 = vrot.slane %v1281_v2, 1 }
  0x1e   : > { %7849 = vst [vmem:[#allocation11_spill] sm:$0xff] %v6218_v32  ;;  %v6240_v38 = vld [vmem:[%s6124_s20 + $0x34] sm:$0xf]  ;;  %v522_v39 = vld [vmem:[%s6124_s20 + $0x90] sm:$0xf]  ;;  %v6248_v42 = vcombine.low %v520_v35, %v521_v36  ;;  %v1286_v28 = vshll.u32 %v6152_v12, 16 }
  0x1f   : > { %5217 = vmatmul.mubr.msk.bf16.gmra.mrb[4].mxu0 %vm769_vm0, %v6210_v29  ;;  %7850 = vst [vmem:[#allocation12_spill] sm:$0xff] %v6240_v38  ;;  %v523_v40 = vld [vmem:[%s6124_s20 + $0x94] sm:$0xf]  ;;  %v6254_v43 = vcombine.low %v6237_v37, %v6240_v38  ;;  %v6259_v45 = vld [vmem:[%s6124_s20 + $0x38] sm:$0xf]  ;;  %v1302_v2 = vshll.u32 %v6210_v29, 16 }
  0x20   : > { %5220 = vmatprep.mubr.msk.bf16.mxu0 %vm769_vm0, %v6216_v31  ;;  %7851 = vst [vmem:[#allocation13_spill] sm:$0xff] %v6248_v42  ;;  %v6256_v44 = vcombine.low %v522_v39, %v523_v40  ;;  %v6271_v46 = vld [vmem:[%s6124_s20 + $0x3c] sm:$0xf]  ;;  %v524_v47 = vld [vmem:[%s6124_s20 + $0x98] sm:$0xf]  ;;  %v1306_v11 = vshrl.u32 %v6210_v29, 16 }
  0x21   : > { %5341 = vmatmul.mubr.msk.bf16.gmra.mrb[4].mxu1 %vm769_vm0, %v6212_v30  ;;  %7853 = vst [vmem:[#allocation15_spill] sm:$0xff] %v6271_v46  ;;  %v525_v48 = vld [vmem:[%s6124_s20 + $0x9c] sm:$0xf]  ;;  %v6280_v49 = vld [vmem:[%s6124_s20 + $0x40] sm:$0xf]  ;;  %v6289_v53 = vcombine.low %v6259_v45, %v6271_v46  ;;  %v1314_v16 = vshrl.u32 %v6216_v31, 16 }
  0x22   : > { %5344 = vmatprep.mubr.msk.bf16.mxu1 %vm769_vm0, %v6218_v32  ;;  %7852 = vst [vmem:[#allocation14_spill] sm:$0xff] %v6256_v44  ;;  %7854 = vst [vmem:[#allocation16_spill] sm:$0xff] %v6280_v49  ;;  %v6283_v50 = vld [vmem:[%s6124_s20 + $0x44] sm:$0xf]  ;;  %v526_v51 = vld [vmem:[%s6124_s20 + $0xa0] sm:$0xf]  ;;  %v6291_v54 = vcombine.low %v524_v47, %v525_v48  ;;  %v1284_v47 = vor.u32 %v1283_v27, %v1279_v24 }
  0x23   : > { %7855 = vst [vmem:[#allocation17_spill] sm:$0xff] %v6283_v50  ;;  %v527_v52 = vld [vmem:[%s6124_s20 + $0xa4] sm:$0xf]  ;;  %v6295_v55 = vcombine.low %v6280_v49, %v6283_v50  ;;  %v6304_v57 = vld [vmem:[%s6124_s20 + $0x48] sm:$0xf]  ;;  %v1288_v48 = vrot.slane %v1286_v28, 1 }
  0x24   : > { %7856 = vst [vmem:[#allocation18_spill] sm:$0xff] %v6291_v54  ;;  %v6297_v56 = vcombine.low %v526_v51, %v527_v52  ;;  %7858 = vst [vmem:[#allocation20_spill] sm:$0xff] %v6304_v57  ;;  %v6307_v58 = vld [vmem:[%s6124_s20 + $0x4c] sm:$0xf]  ;;  %v528_v59 = vld [vmem:[%s6124_s20 + $0xa8] sm:$0xf] }
  0x25   : > { %7859 = vst [vmem:[#allocation21_spill] sm:$0xff] %v6307_v58  ;;  %v529_v60 = vld [vmem:[%s6124_s20 + $0xac] sm:$0xf]  ;;  %v6316_v61 = vld [vmem:[%s6124_s20 + $0x50] sm:$0xf]  ;;  %v6326_v3 = vcombine.low %v6304_v57, %v6307_v58  ;;  %v1318_v6 = vshll.u32 %v6246_v41, 16 }
  0x26   : > { %7857 = vst [vmem:[#allocation19_spill] sm:$0xff] %v6297_v56  ;;  %7860 = vst [vmem:[#allocation22_spill] sm:$0xff] %v6316_v61  ;;  %v6319_v62 = vld [vmem:[%s6124_s20 + $0x54] sm:$0xf]  ;;  %v530_v63 = vld [vmem:[%s6124_s20 + $0xb0] sm:$0xf]  ;;  %v6328_v7 = vcombine.low %v528_v59, %v529_v60 }
  0x27   : > { %5221 = vmatmul.mubr.msk.bf16.gmra.mrb[8].mxu0 %vm769_vm0, %v6246_v41  ;;  %7861 = vst [vmem:[#allocation23_spill] sm:$0xff] %v6319_v62  ;;  %v531_v0 = vld [vmem:[%s6124_s20 + $0xb4] sm:$0xf]  ;;  %v6332_v18 = vcombine.low %v6316_v61, %v6319_v62  ;;  %v6343_v35 = vld [vmem:[%s6124_s20 + $0x58] sm:$0xf]  ;;  %v1290_v59 = vshrl.u32 %v6152_v12, 16 }
  0x28   : > { %5224 = vmatprep.mubr.msk.bf16.mxu0 %vm769_vm0, %v6254_v43  ;;  %7862 = vst [vmem:[#allocation24_spill] sm:$0xff] %v6328_v7  ;;  %v6334_v23 = vcombine.low %v530_v63, %v531_v0  ;;  %7864 = vst [vmem:[#allocation26_spill] sm:$0xff] %v6343_v35  ;;  %v6350_v36 = vld [vmem:[%s6124_s20 + $0x5c] sm:$0xf]  ;;  %v532_v39 = vld [vmem:[%s6124_s20 + $0xb8] sm:$0xf]  ;;  %v6363_v63 = vsel %vm1277_vm1, %v1284_v47, %v1288_v48 }
  0x29   : > { %5345 = vmatmul.mubr.msk.bf16.gmra.mrb[8].mxu1 %vm769_vm0, %v6248_v42  ;;  %7865 = vst [vmem:[#allocation27_spill] sm:$0xff] %v6350_v36  ;;  %v533_v40 = vld [vmem:[%s6124_s20 + $0xbc] sm:$0xf]  ;;  %v6356_v51 = vcombine.low %v6343_v35, %v6350_v36  ;;  %v1294_v60 = vshll.u32 %v6171_v17, 16  ;;  %v1298_v0 = vshrl.u32 %v6171_v17, 16  ;;  %v1292_v24 = vor.u32 %v1290_v59, %v1288_v48  ;;  %v6385_v48 = vld [vmem:[%s7804_s2 + $0x10] sm:$0xff]  }
  0x2a   : > { %5348 = vmatprep.mubr.msk.bf16.mxu1 %vm769_vm0, %v6256_v44  ;;  %7863 = vst [vmem:[#allocation25_spill] sm:$0xff] %v6334_v23  ;;  %v6358_v52 = vcombine.low %v532_v39, %v533_v40  ;;  %v1304_v39 = vrot.slane %v1302_v2, 1  ;;  %v1310_v40 = vshll.u32 %v6216_v31, 16  ;;  %v1330_v10 = vshrl.u32 %v6254_v43, 16 }
  0x2b   : > { %7866 = vst [vmem:[#allocation28_spill] sm:$0xff] %v6356_v51  ;;  %v1296_v27 = vrot.slane %v1294_v60, 1  ;;  %v1338_v36 = vshrl.u32 %v6289_v53, 16  ;;  %v1350_v62 = vshll.u32 %v6326_v3, 16  ;;  %v1366_v58 = vshll.u32 %v6356_v51, 16 }
  0x2c   : > { %7867 = vst [vmem:[#allocation29_spill] sm:$0xff] %v6358_v52  ;;  %v1312_v60 = vrot.slane %v1310_v40, 1  ;;  %v1322_v40 = vshrl.u32 %v6246_v41, 16  ;;  %v1382_v50 = vshll.u32 %v6156_v13, 16  ;;  %v1398_v46 = vshll.u32 %v6212_v30, 16 }
  0x2d   : > { %v1300_v28 = vor.u32 %v1298_v0, %v1296_v27  ;;  %v6377_v47 = vsel %vm1277_vm1, %v1292_v24, %v1296_v27  ;;  %v1308_v0 = vor.u32 %v1306_v11, %v1304_v39  ;;  %v1320_v24 = vrot.slane %v1318_v6, 1 }
  0x2e   : > { %v1316_v2 = vor.u32 %v1314_v16, %v1312_v60  ;;  %v1326_v27 = vshll.u32 %v6254_v43, 16  ;;  %v1334_v11 = vshll.u32 %v6289_v53, 16  ;;  %v1410_v49 = vshrl.u32 %v6218_v32, 16 }
  0x2f   : > { %5225 = vmatmul.mubr.msk.bf16.gmra.mrb[12].mxu0 %vm769_vm0, %v6289_v53  ;;  %v6388_v59 = vsel %vm1277_vm1, %v1300_v28, %v1304_v39  ;;  %v6402_v28 = vsel %vm1277_vm1, %v1308_v0, %v1312_v60  ;;  %v1324_v16 = vor.u32 %v1322_v40, %v1320_v24  ;;  %v1342_v0 = vshll.u32 %v6295_v55, 16 }
  0x30   : > { %5228 = vmatprep.mubr.msk.bf16.mxu0 %vm769_vm0, %v6295_v55  ;;  %v1328_v6 = vrot.slane %v1326_v27, 1  ;;  %v1336_v60 = vrot.slane %v1334_v11, 1  ;;  %v1346_v27 = vshrl.u32 %v6295_v55, 16  ;;  %v1352_v11 = vrot.slane %v1350_v62, 1 }
  0x31   : > { %5349 = vmatmul.mubr.msk.bf16.gmra.mrb[12].mxu1 %vm769_vm0, %v6291_v54  ;;  %v1414_v38 = vshll.u32 %v6248_v42, 16 }
  0x32   : > { %5352 = vmatprep.mubr.msk.bf16.mxu1 %vm769_vm0, %v6297_v56  ;;  %v1332_v39 = vor.u32 %v1330_v10, %v1328_v6  ;;  %v1344_v10 = vrot.slane %v1342_v0, 1  ;;  %v1362_v0 = vshrl.u32 %v6332_v18, 16 }
  0x34   : > { %v6424_v5 = vsel %vm1277_vm1, %v1332_v39, %v1336_v60  ;;  %v1348_v40 = vor.u32 %v1346_v27, %v1344_v10  ;;  %v1354_v39 = vshrl.u32 %v6326_v3, 16  ;;  %v1368_v27 = vrot.slane %v1366_v58, 1 }
  0x36   : > { %v6442_v35 = vsel %vm1277_vm1, %v1348_v40, %v1352_v11  ;;  %v1370_v40 = vshrl.u32 %v6356_v51, 16 }
  0x37   : > { %5229 = vmatmul.mubr.msk.bf16.gmra.mrb[16].mxu0 %vm769_vm0, %v6326_v3 }
  0x38   : > { %5232 = vmatprep.mubr.msk.bf16.mxu0 %vm769_vm0, %v6332_v18 }
  0x39   : > { %5353 = vmatmul.mubr.msk.bf16.gmra.mrb[16].mxu1 %vm769_vm0, %v6328_v7 }
  0x3a   : > { %5356 = vmatprep.mubr.msk.bf16.mxu1 %vm769_vm0, %v6334_v23 }
  0x3f   : > { %5233 = vmatmul.mubr.msk.bf16.gmra.mrb[20].mxu0 %vm769_vm0, %v6356_v51 }
  0x40   : > { %5236 = vmatprep.mubr.msk.bf16.mxu0 %vm769_vm0, %v6140_v8 }
  0x41   : > { %5357 = vmatmul.mubr.msk.bf16.gmra.mrb[20].mxu1 %vm769_vm0, %v6358_v52 }
  0x42   : > { %5462 = vmatprep.mubr.msk.bf16.mxu1 %vm769_vm0, %v6363_v63 }
  0x47   : > { %5237 = vmatmul.mubr.msk.bf16.gmra.mrb[24].mxu0 %vm769_vm0, %v6156_v13 }
  0x48   : > { %5240 = vmatprep.mubr.msk.bf16.mxu0 %vm769_vm0, %v6184_v20 }
  0x49   : > { %5463 = vmatmul.mubr.msk.bf16.vlgmr.msra.gmra.mrb[24].mxu1 %vm769_vm0, %v6377_v47 }
  0x4a   : > { %5511 = vmatpush3.bf16.msra.mxu1 %v6177_v19  ;;  %5466 = vmatprep.mubr.msk.bf16.mxu1 %vm769_vm0, %v6388_v59  ;;  %v6406_v19 = vsel %vm1277_vm1, %v1316_v2, %v1320_v24  ;;  %v6420_v2 = vsel %vm1277_vm1, %v1324_v16, %v1328_v6  ;;  %v1340_v24 = vor.u32 %v1338_v36, %v1336_v60  ;;  %v1358_v6 = vshll.u32 %v6332_v18, 16 }
  0x4b   : > { %5560 = vmatprep.subr.bf16.mxu1 %v6385_v48  ;;  %v1356_v36 = vor.u32 %v1354_v39, %v1352_v11  ;;  %v1372_v11 = vor.u32 %v1370_v40, %v1368_v27 }
  0x4c   : > { %v6438_v16 = vsel %vm1277_vm1, %v1340_v24, %v1344_v10  ;;  %v1360_v62 = vrot.slane %v1358_v6, 1  ;;  %v1374_v10 = vshll.u32 %v6140_v8, 16  ;;  %v1378_v6 = vshrl.u32 %v6140_v8, 16 }
  0x4e   : > { %v1364_v60 = vor.u32 %v1362_v0, %v1360_v62  ;;  %v6456_v24 = vsel %vm1277_vm1, %v1356_v36, %v1360_v62  ;;  %v1376_v58 = vrot.slane %v1374_v10, 1  ;;  %v1384_v0 = vrot.slane %v1382_v50, 1 }
  0x4f   : > { %5241 = vmatmul.mubr.msk.bf16.gmra.mrb[28].mxu0 %vm769_vm0, %v6212_v30  ;;  %v1386_v36 = vshrl.u32 %v6156_v13, 16  ;;  %v1394_v10 = vshrl.u32 %v6184_v20, 16 }
  0x50   : > { %5244 = vmatprep.mubr.msk.bf16.mxu0 %vm769_vm0, %v6218_v32  ;;  %v6460_v61 = vsel %vm1277_vm1, %v1364_v60, %v1368_v27  ;;  %v1380_v39 = vor.u32 %v1378_v6, %v1376_v58  ;;  %v6473_v62 = vsel %vm1277_vm1, %v1372_v11, %v1376_v58  ;;  %v1390_v60 = vshll.u32 %v6184_v20, 16 }
  0x51   : > { %5467 = vmatmul.mubr.msk.bf16.gmra.mrb[28].mxu1 %vm769_vm0, %v6402_v28  ;;  %v1388_v50 = vor.u32 %v1386_v36, %v1384_v0  ;;  %v1400_v6 = vrot.slane %v1398_v46, 1  ;;  %v1406_v58 = vshll.u32 %v6218_v32, 16 }
  0x52   : > { %5470 = vmatprep.mubr.msk.bf16.mxu1 %vm769_vm0, %v6406_v19  ;;  %v6478_v57 = vsel %vm1277_vm1, %v1380_v39, %v1384_v0  ;;  %v1392_v27 = vrot.slane %v1390_v60, 1  ;;  %v1402_v39 = vshrl.u32 %v6212_v30, 16 }
  0x53   : > { %v1408_v46 = vrot.slane %v1406_v58, 1 }
  0x54   : > { %v1396_v40 = vor.u32 %v1394_v10, %v1392_v27  ;;  %v6492_v11 = vsel %vm1277_vm1, %v1388_v50, %v1392_v27  ;;  %v1404_v36 = vor.u32 %v1402_v39, %v1400_v6  ;;  %v1416_v10 = vrot.slane %v1414_v38, 1 }
  0x55   : > { %v1412_v60 = vor.u32 %v1410_v49, %v1408_v46  ;;  %v1422_v50 = vshll.u32 %v6256_v44, 16  ;;  %v1418_v27 = vshrl.u32 %v6248_v42, 16  ;;  %v1438_v39 = vshll.u32 %v6297_v56, 16 }
  0x56   : > { %v6503_v0 = vsel %vm1277_vm1, %v1396_v40, %v1400_v6  ;;  %v1430_v40 = vshll.u32 %v6291_v54, 16 }
  0x57   : > { %5245 = vmatmul.mubr.msk.bf16.gmra.mrb[32].mxu0 %vm769_vm0, %v6248_v42  ;;  %v1424_v38 = vrot.slane %v1422_v50, 1  ;;  %v1420_v49 = vor.u32 %v1418_v27, %v1416_v10  ;;  %v1446_v50 = vshll.u32 %v6328_v7, 16 }
  0x58   : > { %5248 = vmatprep.mubr.msk.bf16.mxu0 %vm769_vm0, %v6256_v44  ;;  %v1432_v58 = vrot.slane %v1430_v40, 1  ;;  %v1454_v40 = vshll.u32 %v6334_v23, 16 }
  0x59   : > { %5471 = vmatmul.mubr.msk.bf16.gmra.mrb[32].mxu1 %vm769_vm0, %v6420_v2 }
  0x5a   : > { %5474 = vmatprep.mubr.msk.bf16.mxu1 %vm769_vm0, %v6424_v5 }
  0x5f   : > { %5249 = vmatmul.mubr.msk.bf16.gmra.mrb[36].mxu0 %vm769_vm0, %v6291_v54 }
  0x60   : > { %5252 = vmatprep.mubr.msk.bf16.mxu0 %vm769_vm0, %v6297_v56 }
  0x61   : > { %5475 = vmatmul.mubr.msk.bf16.gmra.mrb[36].mxu1 %vm769_vm0, %v6438_v16 }
  0x62   : > { %5478 = vmatprep.mubr.msk.bf16.mxu1 %vm769_vm0, %v6442_v35 }
  0x67   : > { %5253 = vmatmul.mubr.msk.bf16.gmra.mrb[40].mxu0 %vm769_vm0, %v6328_v7 }
  0x68   : > { %5256 = vmatprep.mubr.msk.bf16.mxu0 %vm769_vm0, %v6334_v23 }
  0x69   : > { %5479 = vmatmul.mubr.msk.bf16.gmra.mrb[40].mxu1 %vm769_vm0, %v6456_v24 }
  0x6a   : > { %5482 = vmatprep.mubr.msk.bf16.mxu1 %vm769_vm0, %v6460_v61 }
  0x6f   : > { %5257 = vmatmul.mubr.msk.bf16.gmra.mrb[44].mxu0 %vm769_vm0, %v6358_v52 }
  0x70   : > { %5262 = vmatprep.mubr.msk.bf16.mxu0 %vm769_vm0, %v6363_v63  ;;  %v6500_v63 = vld [vmem:[%s7804_s2 + $0x8] sm:$0xff]  }
  0x71   : > { %5483 = vmatmul.mubr.msk.bf16.gmra.mrb[44].mxu1 %vm769_vm0, %v6473_v62 }
  0x72   : > { %5486 = vmatprep.mubr.msk.bf16.mxu1 %vm769_vm0, %v6478_v57 }
  0x77   : > { %5263 = vmatmul.mubr.msk.bf16.vlgmr.msra.gmra.mrb[48].mxu0 %vm769_vm0, %v6377_v47  ;;  %v6517_v47 = vsel %vm1277_vm1, %v1404_v36, %v1408_v46  ;;  %v1425_v46 = vsel %vm1277_vm1, %v1420_v49, %v1424_v38  ;;  %v1434_v36 = vshrl.u32 %v6291_v54, 16  ;;  %v1450_v49 = vshrl.u32 %v6328_v7, 16 }
  0x78   : > { %5311 = vmatpush3.bf16.msra.mxu0 %v6106_v1  ;;  %5266 = vmatprep.mubr.msk.bf16.mxu0 %vm769_vm0, %v6388_v59  ;;  %v6521_v1 = vsel %vm1277_vm1, %v1412_v60, %v1416_v10  ;;  %v1426_v59 = vshrl.u32 %v6256_v44, 16  ;;  %v1442_v60 = vshrl.u32 %v6297_v56, 16  ;;  %v6552_v56 = vld [vmem:[%s6264_s26] sm:$0xf] }
  0x79   : > { %5487 = vmatmul.mubr.msk.bf16.gmra.mrb[48].mxu1 %vm769_vm0, %v6492_v11  ;;  %5360 = vmatprep.subr.bf16.mxu0 %v6500_v63  ;;  %v1436_v10 = vor.u32 %v1434_v36, %v1432_v58  ;;  %v4689_v36 = vcombine.low %v6552_v56, %v6552_v56 }
  0x7a   : > { %5490 = vmatprep.mubr.msk.bf16.mxu1 %vm769_vm0, %v6503_v0  ;;  %v1428_v6 = vor.u32 %v1426_v59, %v1424_v38  ;;  %v1448_v59 = vrot.slane %v1446_v50, 1 }
  0x7f   : > { %5267 = vmatmul.mubr.msk.bf16.gmra.mrb[52].mxu0 %vm769_vm0, %v6402_v28  ;;  %v1433_v28 = vsel %vm1277_vm1, %v1428_v6, %v1432_v58  ;;  %v1452_v58 = vor.u32 %v1450_v49, %v1448_v59  ;;  %v6702_v49 = vld [vmem:[%s7806_s4] ss:$0 sm:$0xff] }
  0x80   : > { %5270 = vmatprep.mubr.msk.bf16.mxu0 %vm769_vm0, %v6406_v19  ;;  %v1440_v19 = vrot.slane %v1438_v39, 1  ;;  %v1462_v39 = vshll.u32 %v6358_v52, 16 }
  0x81   : > { %5491 = vmatmul.mubr.msk.bf16.gmra.mrb[52].mxu1 %vm769_vm0, %v6517_v47 }
  0x82   : > { %5494 = vmatprep.mubr.msk.bf16.mxu1 %vm769_vm0, %v6521_v1  ;;  %v1444_v27 = vor.u32 %v1442_v60, %v1440_v19  ;;  %v1441_v38 = vsel %vm1277_vm1, %v1436_v10, %v1440_v19  ;;  %v1464_v50 = vrot.slane %v1462_v39, 1  ;;  %v1466_v10 = vshrl.u32 %v6358_v52, 16 }
  0x84   : > { %v1449_v6 = vsel %vm1277_vm1, %v1444_v27, %v1448_v59  ;;  %v1470_v27 = vshll.u32 %v4689_v36, 16 }
  0x86   : > { %v1472_v59 = vrot.slane %v1470_v27, 1 }
  0x87   : > { %5271 = vmatmul.mubr.msk.bf16.gmra.mrb[56].mxu0 %vm769_vm0, %v6420_v2  ;;  %v1458_v2 = vshrl.u32 %v6334_v23, 16 }
  0x88   : > { %5274 = vmatprep.mubr.msk.bf16.mxu0 %vm769_vm0, %v6424_v5  ;;  %v1456_v5 = vrot.slane %v1454_v40, 1 }
  0x89   : > { %5495 = vmatmul.mubr.msk.bf16.gmra.mrb[56].mxu1 %vm769_vm0, %v1425_v46 }
  0x8a   : > { %5498 = vmatprep.mubr.msk.bf16.mxu1 %vm769_vm0, %v1433_v28  ;;  %v1460_v60 = vor.u32 %v1458_v2, %v1456_v5  ;;  %v1457_v19 = vsel %vm1277_vm1, %v1452_v58, %v1456_v5 }
  0x8f   : > { %5275 = vmatmul.mubr.msk.bf16.gmra.mrb[60].mxu0 %vm769_vm0, %v6438_v16  ;;  %v1465_v16 = vsel %vm1277_vm1, %v1460_v60, %v1464_v50 }
  0x90   : > { %5278 = vmatprep.mubr.msk.bf16.mxu0 %vm769_vm0, %v6442_v35  ;;  %v1468_v35 = vor.u32 %v1466_v10, %v1464_v50 }
  0x91   : > { %5499 = vmatmul.mubr.msk.bf16.gmra.mrb[60].mxu1 %vm769_vm0, %v1441_v38 }
  0x92   : > { %5502 = vmatprep.mubr.msk.bf16.mxu1 %vm769_vm0, %v1449_v6  ;;  %v1473_v40 = vsel %vm1277_vm1, %v1468_v35, %v1472_v59 }
  0x97   : > { %5279 = vmatmul.mubr.msk.bf16.gmra.mrb[64].mxu0 %vm769_vm0, %v6456_v24 }
  0x98   : > { %5282 = vmatprep.mubr.msk.bf16.mxu0 %vm769_vm0, %v6460_v61  ;;  %v6582_v61 = vld [vmem:[%s7804_s2] sm:$0xff]  }
  0x99   : > { %5503 = vmatmul.mubr.msk.bf16.gmra.mrb[64].mxu1 %vm769_vm0, %v1457_v19 }
  0x9a   : > { %5506 = vmatprep.mubr.msk.bf16.mxu1 %vm769_vm0, %v1465_v16 }
  0x9f   : > { %5283 = vmatmul.mubr.msk.bf16.gmra.mrb[68].mxu0 %vm769_vm0, %v6473_v62 }
  0xa0   : > { %5286 = vmatprep.mubr.msk.bf16.mxu0 %vm769_vm0, %v6478_v57  ;;  %v6630_v57 = vld [vmem:[%s7804_s2 + $0x38] sm:$0xff]  }
  0xa1   : > { %5507 = vmatmul.mubr.msk.bf16.gmra.mrb[68].mxu1 %vm769_vm0, %v1473_v40 }
  0xa2   : > { %5512 = vmatprep.mubr.msk.bf16.mxu1 %vm769_vm0, %v6127_v4 }
  0xa7   : > { %5287 = vmatmul.mubr.msk.bf16.gmra.mrb[72].mxu0 %vm769_vm0, %v6492_v11 }
  0xa8   : > { %5290 = vmatprep.mubr.msk.bf16.mxu0 %vm769_vm0, %v6503_v0 }
  0xa9   : > { %5513 = vmatmul.mubr.msk.bf16.vlgmr.msra.gmra.mrb[24].mxu1 %vm769_vm0, %v6152_v12 }
  0xaa   : > { %5561 = vmatpush3.bf16.msra.mxu1 %v6385_v48  ;;  %5516 = vmatprep.mubr.msk.bf16.mxu1 %vm769_vm0, %v6171_v17  ;;  %v6648_v48 = vcombine.low %v6162_v15, %v6187_v21  ;;  %v6664_v21 = vcombine.low %v6190_v22, %v6195_v25  ;;  %v6684_v25 = vld [vmem:[%s7805_s3] ss:$0 sm:$0xff] }
  0xab   : > { %5610 = vmatprep.subr.bf16.mxu1 %v6582_v61 }
  0xac   : > { %v3694_v15 = vshrl.u32 %v6648_v48, 16 }
  0xaf   : > { %5291 = vmatmul.mubr.msk.bf16.gmra.mrb[76].mxu0 %vm769_vm0, %v6517_v47 }
  0xb0   : > { %5294 = vmatprep.mubr.msk.bf16.mxu0 %vm769_vm0, %v6521_v1 }
  0xb1   : > { %5517 = vmatmul.mubr.msk.bf16.gmra.mrb[28].mxu1 %vm769_vm0, %v6210_v29 }
  0xb2   : > { %5520 = vmatprep.mubr.msk.bf16.mxu1 %vm769_vm0, %v6216_v31 }
  0xb7   : > { %5295 = vmatmul.mubr.msk.bf16.gmra.mrb[80].mxu0 %vm769_vm0, %v1425_v46  ;;  %v6669_v46 = vcombine.low %v6202_v26, %v6225_v33  ;;  %v3701_v26 = vshrl.u32 %v6664_v21, 16 }
  0xb8   : > { %5298 = vmatprep.mubr.msk.bf16.mxu0 %vm769_vm0, %v1433_v28 }
  0xb9   : > { %5521 = vmatmul.mubr.msk.bf16.gmra.mrb[32].mxu1 %vm769_vm0, %v6246_v41  ;;  %v3704_v33 = vshll.u32 %v6669_v46, 16 }
  0xba   : > { %5524 = vmatprep.mubr.msk.bf16.mxu1 %vm769_vm0, %v6254_v43 }
  0xbb   : > { %v3706_v5 = vrot.slane %v3704_v33, 1 }
  0xbf   : > { %5299 = vmatmul.mubr.msk.bf16.gmra.mrb[84].mxu0 %vm769_vm0, %v1441_v38  ;;  %v6694_v38 = vcombine.low %v6228_v34, %v6237_v37  ;;  %v3708_v34 = vshrl.u32 %v6669_v46, 16 }
  0xc0   : > { %5302 = vmatprep.mubr.msk.bf16.mxu0 %vm769_vm0, %v1449_v6 }
  0xc1   : > { %5525 = vmatmul.mubr.msk.bf16.gmra.mrb[36].mxu1 %vm769_vm0, %v6289_v53  ;;  %v3711_v37 = vshll.u32 %v6694_v38, 16  ;;  %v3715_v33 = vshrl.u32 %v6694_v38, 16 }
  0xc2   : > { %5528 = vmatprep.mubr.msk.bf16.mxu1 %vm769_vm0, %v6295_v55 }
  0xc7   : > { %5303 = vmatmul.mubr.msk.bf16.gmra.mrb[88].mxu0 %vm769_vm0, %v1457_v19 }
  0xc8   : > { %5306 = vmatprep.mubr.msk.bf16.mxu0 %vm769_vm0, %v1465_v16 }
  0xc9   : > { %5529 = vmatmul.mubr.msk.bf16.gmra.mrb[40].mxu1 %vm769_vm0, %v6326_v3 }
  0xca   : > { %5532 = vmatprep.mubr.msk.bf16.mxu1 %vm769_vm0, %v6332_v18 }
  0xcf   : > { %5307 = vmatmul.mubr.msk.bf16.gmra.mrb[92].mxu0 %vm769_vm0, %v1473_v40 }
  0xd0   : > { %5312 = vmatprep.mubr.msk.bf16.mxu0 %vm769_vm0, %v6127_v4  ;;  %v6644_v4 = vcombine.low %v6143_v9, %v6159_v14  ;;  %v3690_v14 = vshll.u32 %v6648_v48, 16 }
  0xd1   : > { %5533 = vmatmul.mubr.msk.bf16.gmra.mrb[44].mxu1 %vm769_vm0, %v6356_v51 }
  0xd2   : > { %5536 = vmatprep.mubr.msk.bf16.mxu1 %vm769_vm0, %v6140_v8  ;;  %v3684_v24 = vshrl.u32 %v6644_v4, 16  ;;  %v3686_v9 = vshll.u32 %v6644_v4, 16  ;;  %v3692_v11 = vrot.slane %v3690_v14, 1 }
  0xd4   : > { %v3688_v62 = vrot.slane %v3686_v9, 1  ;;  %v3696_v47 = vor.u32 %v3694_v15, %v3692_v11  ;;  %v3713_v9 = vrot.slane %v3711_v37, 1 }
  0xd6   : > { %v3689_v0 = vor.u32 %v3688_v62, %v3684_v24  ;;  %v3710_v24 = vor.u32 %v3708_v34, %v3706_v5  ;;  %v7868_v62 = vld [vmem:[#allocation12_spill] sm:$0xff] }
  0xd7   : > { %5313 = vmatmul.mubr.msk.bf16.vlgmr.msra.gmra.mrb[48].mxu0 %vm769_vm0, %v6152_v12 }
  0xd8   : > { %5361 = vmatpush3.bf16.msra.mxu0 %v6500_v63  ;;  %5316 = vmatprep.mubr.msk.bf16.mxu0 %vm769_vm0, %v6171_v17  ;;  %v3697_v63 = vshll.u32 %v6664_v21, 16  ;;  %v6672_v28 = vsel %vm1277_vm1, %v3689_v0, %v3692_v11  ;;  %v6731_v11 = vcombine.low %v7868_v62, %v6259_v45  ;;  %v7869_v45 = vld [vmem:[#allocation19_spill] sm:$0xff] }
  0xd9   : > { %5537 = vmatmul.mubr.msk.bf16.gmra.mrb[48].mxu1 %vm769_vm0, %v6156_v13  ;;  %5410 = vmatprep.subr.bf16.mxu0 %v6630_v57 }
  0xda   : > { %5540 = vmatprep.mubr.msk.bf16.mxu1 %vm769_vm0, %v6184_v20  ;;  %v3699_v1 = vrot.slane %v3697_v63, 1 }
  0xdc   : > { %v6679_v22 = vsel %vm1277_vm1, %v3696_v47, %v3699_v1  ;;  %v3703_v39 = vor.u32 %v3701_v26, %v3699_v1  ;;  %v6739_v47 = vsel %vm1277_vm1, %v3710_v24, %v3713_v9 }
  0xde   : > { %v6715_v27 = vsel %vm1277_vm1, %v3703_v39, %v3706_v5  ;;  %v7870_v5 = vld [vmem:[#allocation16_spill] sm:$0xff] }
  0xdf   : > { %5317 = vmatmul.mubr.msk.bf16.gmra.mrb[52].mxu0 %vm769_vm0, %v6210_v29 }
  0xe0   : > { %5320 = vmatprep.mubr.msk.bf16.mxu0 %vm769_vm0, %v6216_v31 }
  0xe1   : > { %5541 = vmatmul.mubr.msk.bf16.gmra.mrb[52].mxu1 %vm769_vm0, %v6212_v30 }
  0xe2   : > { %5544 = vmatprep.mubr.msk.bf16.mxu1 %vm769_vm0, %v6218_v32 }
  0xe7   : > { %5321 = vmatmul.mubr.msk.bf16.gmra.mrb[56].mxu0 %vm769_vm0, %v6246_v41 }
  0xe8   : > { %5324 = vmatprep.mubr.msk.bf16.mxu0 %vm769_vm0, %v6254_v43 }
  0xe9   : > { %5545 = vmatmul.mubr.msk.bf16.gmra.mrb[56].mxu1 %vm769_vm0, %v6248_v42 }
  0xea   : > { %5548 = vmatprep.mubr.msk.bf16.mxu1 %vm769_vm0, %v6256_v44  ;;  %v5214_v6 = vpop.f32.mrb[0].mxu0 }
  0xeb   : > { %v1075_v58 = vmul.f32 %v5214_v6, %v6684_v25  ;;  %v876_v36 = vpop.f32.mrb[1].mxu0  ;;  %v3718_v6 = vshll.u32 %v6731_v11, 16 }
  0xec   : > { %v6704_v2 = vpop.f32.mrb[0].mxu1  ;;  %v1073_v50 = vmul.f32 %v6684_v25, %v876_v36  ;;  %v5215_v19 = vpop.f32.mrb[2].mxu0 }
  0xed   : > { %v6707_v60 = vpop.f32.mrb[1].mxu1  ;;  %v1129_v16 = vadd.f32 %v6702_v49, %v1075_v58  ;;  %v1076_v35 = vmul.f32 %v5215_v19, %v6684_v25  ;;  %v879_v59 = vpop.f32.mrb[3].mxu0  ;;  %v7871_v58 = vld [vmem:[#allocation15_spill] sm:$0xff]  ;;  %v3717_v19 = vor.u32 %v3715_v33, %v3713_v9 }
  0xee   : > { %v6712_v10 = vpop.f32.mrb[2].mxu1  ;;  %v1127_v14 = vadd.f32 %v6702_v49, %v1073_v50  ;;  %v1074_v15 = vmul.f32 %v6684_v25, %v879_v59  ;;  %v6751_v36 = vcombine.low %v7871_v58, %v7870_v5 }
  0xef   : > { %v6719_v40 = vpop.f32.mrb[3].mxu1  ;;  %v1177_v63 = vmax.f32 %v1129_v16, 0.0  ;;  %v1130_v0 = vadd.f32 %v6702_v49, %v1076_v35  ;;  %5325 = vmatmul.mubr.msk.bf16.gmra.mrb[60].mxu0 %vm769_vm0, %v6289_v53  ;;  %v3720_v16 = vrot.slane %v3718_v6, 1 }
  0xf0   : > { %v1175_v1 = vmax.f32 %v1127_v14, 0.0  ;;  %v1128_v26 = vadd.f32 %v6702_v49, %v1074_v15  ;;  %5328 = vmatprep.mubr.msk.bf16.mxu0 %vm769_vm0, %v6295_v55  ;;  %v3722_v14 = vshrl.u32 %v6731_v11, 16  ;;  %v3725_v15 = vshll.u32 %v6751_v36, 16 }
  0xf1   : > { %5549 = vmatmul.mubr.msk.bf16.gmra.mrb[60].mxu1 %vm769_vm0, %v6291_v54  ;;  %1225 = vst [vmem:[%s6725_s24 + $0x10] sm:$0xff] %v1177_v63  ;;  %v1178_v39 = vmax.f32 %v1130_v0, 0.0 }
  0xf2   : > { %5552 = vmatprep.mubr.msk.bf16.mxu1 %vm769_vm0, %v7869_v45  ;;  %1223 = vst [vmem:[%s6725_s24] sm:$0xff] %v1175_v1  ;;  %v1176_v34 = vmax.f32 %v1128_v26, 0.0  ;;  %v5218_v37 = vpop.f32.mrb[4].mxu0  ;;  %v6767_v1 = vsel %vm1277_vm1, %v3717_v19, %v3720_v16  ;;  %v3727_v5 = vrot.slane %v3725_v15, 1  ;;  %v7872_v19 = vld [vmem:[#allocation20_spill] sm:$0xff] }
  0xf3   : > { %1226 = vst [vmem:[%s6725_s24 + $0x18] sm:$0xff] %v1178_v39  ;;  %v1079_v35 = vmul.f32 %v5218_v37, %v6684_v25  ;;  %v892_v59 = vpop.f32.mrb[5].mxu0  ;;  %v3724_v39 = vor.u32 %v3722_v14, %v3720_v16 }
  0xf4   : > { %v6754_v50 = vpop.f32.mrb[4].mxu1  ;;  %1224 = vst [vmem:[%s6725_s24 + $0x8] sm:$0xff] %v1176_v34  ;;  %v1077_v62 = vmul.f32 %v6684_v25, %v892_v59  ;;  %v5219_v63 = vpop.f32.mrb[6].mxu0 }
  0xf5   : > { %v6758_v24 = vpop.f32.mrb[5].mxu1  ;;  %v1133_v9 = vadd.f32 %v6702_v49, %v1079_v35  ;;  %v1080_v26 = vmul.f32 %v5219_v63, %v6684_v25  ;;  %v895_v33 = vpop.f32.mrb[7].mxu0  ;;  %v7873_v35 = vld [vmem:[#allocation17_spill] sm:$0xff]  ;;  %v6785_v16 = vsel %vm1277_vm1, %v3724_v39, %v3727_v5 }
  0xf6   : > { %v6764_v0 = vpop.f32.mrb[6].mxu1  ;;  %v1131_v58 = vadd.f32 %v6702_v49, %v1077_v62  ;;  %v1078_v34 = vmul.f32 %v6684_v25, %v895_v33  ;;  %v6782_v63 = vcombine.low %v7873_v35, %v7872_v19 }
  0xf7   : > { %v6771_v6 = vpop.f32.mrb[7].mxu1  ;;  %v1181_v37 = vmax.f32 %v1133_v9, 0.0  ;;  %v1134_v59 = vadd.f32 %v6702_v49, %v1080_v26  ;;  %5329 = vmatmul.mubr.msk.bf16.gmra.mrb[64].mxu0 %vm769_vm0, %v6326_v3  ;;  %v7874_v9 = vld [vmem:[#allocation22_spill] sm:$0xff]  ;;  %v7875_v26 = vld [vmem:[#allocation21_spill] sm:$0xff] }
  0xf8   : > { %v1179_v14 = vmax.f32 %v1131_v58, 0.0  ;;  %v1132_v15 = vadd.f32 %v6702_v49, %v1078_v34  ;;  %5332 = vmatprep.mubr.msk.bf16.mxu0 %vm769_vm0, %v6332_v18  ;;  %v6795_v33 = vcombine.low %v7875_v26, %v7874_v9  ;;  %v3732_v19 = vshll.u32 %v6782_v63, 16 }
  0xf9   : > { %5553 = vmatmul.mubr.msk.bf16.gmra.mrb[64].mxu1 %vm769_vm0, %v6328_v7  ;;  %1229 = vst [vmem:[%s6725_s24 + $0x30] sm:$0xff] %v1181_v37  ;;  %v1182_v62 = vmax.f32 %v1134_v59, 0.0  ;;  %v3729_v34 = vshrl.u32 %v6751_v36, 16  ;;  %v3736_v45 = vshrl.u32 %v6782_v63, 16 }
  0xfa   : > { %5556 = vmatprep.mubr.msk.bf16.mxu1 %vm769_vm0, %v6334_v23  ;;  %1227 = vst [vmem:[%s6725_s24 + $0x20] sm:$0xff] %v1179_v14  ;;  %v1180_v39 = vmax.f32 %v1132_v15, 0.0  ;;  %v5222_v58 = vpop.f32.mrb[8].mxu0  ;;  %v3734_v59 = vrot.slane %v3732_v19, 1  ;;  %v3739_v9 = vshll.u32 %v6795_v33, 16 }
  0xfb   : > { %1230 = vst [vmem:[%s6725_s24 + $0x38] sm:$0xff] %v1182_v62  ;;  %v1083_v7 = vmul.f32 %v5222_v58, %v6684_v25  ;;  %v908_v23 = vpop.f32.mrb[9].mxu0  ;;  %v3731_v54 = vor.u32 %v3729_v34, %v3727_v5 }
  0xfc   : > { %v6799_v35 = vpop.f32.mrb[8].mxu1  ;;  %1228 = vst [vmem:[%s6725_s24 + $0x28] sm:$0xff] %v1180_v39  ;;  %v1081_v14 = vmul.f32 %v6684_v25, %v908_v23  ;;  %v5223_v15 = vpop.f32.mrb[10].mxu0  ;;  %v3738_v19 = vor.u32 %v3736_v45, %v3734_v59  ;;  %v3741_v32 = vrot.slane %v3739_v9, 1  ;;  %v7878_v45 = vld [vmem:[#allocation23_spill] sm:$0xff] }
  0xfd   : > { %v6804_v37 = vpop.f32.mrb[9].mxu1  ;;  %v1137_v44 = vadd.f32 %v6702_v49, %v1083_v7  ;;  %v1084_v62 = vmul.f32 %v5223_v15, %v6684_v25  ;;  %v911_v58 = vpop.f32.mrb[11].mxu0  ;;  %v6819_v23 = vsel %vm1277_vm1, %v3731_v54, %v3734_v59  ;;  %v7877_v7 = vld [vmem:[#allocation26_spill] sm:$0xff]  ;;  %v7880_v15 = vld [vmem:[#allocation27_spill] sm:$0xff] }
  0xfe   : > { %v6810_v26 = vpop.f32.mrb[10].mxu1  ;;  %v1135_v30 = vadd.f32 %v6702_v49, %v1081_v14  ;;  %v1082_v39 = vmul.f32 %v6684_v25, %v911_v58  ;;  %v6828_v34 = vcombine.low %v7878_v45, %v7877_v7  ;;  %v6831_v9 = vsel %vm1277_vm1, %v3738_v19, %v3741_v32  ;;  %v7879_v59 = vld [vmem:[#allocation2_spill] sm:$0xff] }
  0xff   : > { %v6814_v42 = vpop.f32.mrb[11].mxu1  ;;  %v1185_v20 = vmax.f32 %v1137_v44, 0.0  ;;  %v1138_v5 = vadd.f32 %v6702_v49, %v1084_v62  ;;  %5333 = vmatmul.mubr.msk.bf16.gmra.mrb[68].mxu0 %vm769_vm0, %v6356_v51  ;;  %v6841_v62 = vcombine.low %v7880_v15, %v7879_v59 }
 0x100   : > { %7876 = vst [vmem:[#allocation12_spill] sm:$0xff] %v6814_v42  ;;  %v1183_v14 = vmax.f32 %v1135_v30, 0.0  ;;  %v1136_v54 = vadd.f32 %v6702_v49, %v1082_v39  ;;  %5362 = vmatprep.mubr.msk.bf16.mxu0 %vm769_vm0, %v6644_v4  ;;  %v3746_v58 = vshll.u32 %v6828_v34, 16  ;;  %v3743_v39 = vshrl.u32 %v6795_v33, 16 }
 0x101   : > { %5557 = vmatmul.mubr.msk.bf16.gmra.mrb[68].mxu1 %vm769_vm0, %v6358_v52  ;;  %1233 = vst [vmem:[%s6725_s24 + $0x50] sm:$0xff] %v1185_v20  ;;  %v1186_v44 = vmax.f32 %v1138_v5, 0.0  ;;  %v3750_v52 = vshrl.u32 %v6828_v34, 16  ;;  %v3753_v59 = vshll.u32 %v6841_v62, 16 }
 0x102   : > { %5562 = vmatprep.mubr.msk.bf16.mxu1 %vm769_vm0, %v6644_v4  ;;  %1231 = vst [vmem:[%s6725_s24 + $0x40] sm:$0xff] %v1183_v14  ;;  %v1184_v19 = vmax.f32 %v1136_v54, 0.0  ;;  %v5226_v30 = vpop.f32.mrb[12].mxu0  ;;  %v3748_v5 = vrot.slane %v3746_v58, 1  ;;  %v3745_v13 = vor.u32 %v3743_v39, %v3741_v32  ;;  %v7885_v39 = vld [vmem:[#allocation5_spill] sm:$0xff] }
 0x103   : > { %1234 = vst [vmem:[%s6725_s24 + $0x58] sm:$0xff] %v1186_v44  ;;  %v1087_v45 = vmul.f32 %v5226_v30, %v6684_v25  ;;  %v924_v4 = vpop.f32.mrb[13].mxu0 }
 0x104   : > { %v6845_v7 = vpop.f32.mrb[12].mxu1  ;;  %1232 = vst [vmem:[%s6725_s24 + $0x48] sm:$0xff] %v1184_v19  ;;  %v1085_v14 = vmul.f32 %v6684_v25, %v924_v4  ;;  %v5227_v54 = vpop.f32.mrb[14].mxu0  ;;  %v3752_v58 = vor.u32 %v3750_v52, %v3748_v5  ;;  %v6865_v4 = vsel %vm1277_vm1, %v3745_v13, %v3748_v5  ;;  %v7886_v52 = vld [vmem:[#allocation3_spill] sm:$0xff] }
 0x105   : > { %7881 = vst [vmem:[#allocation16_spill] sm:$0xff] %v6845_v7  ;;  %v6850_v20 = vpop.f32.mrb[13].mxu1  ;;  %v1141_v7 = vadd.f32 %v6702_v49, %v1087_v45  ;;  %v1088_v44 = vmul.f32 %v5227_v54, %v6684_v25  ;;  %v927_v30 = vpop.f32.mrb[15].mxu0  ;;  %v6874_v45 = vcombine.low %v7886_v52, %v7885_v39 }
 0x106   : > { %7882 = vst [vmem:[#allocation15_spill] sm:$0xff] %v6850_v20  ;;  %v6856_v15 = vpop.f32.mrb[14].mxu1  ;;  %v3755_v20 = vrot.slane %v3753_v59, 1  ;;  %v1139_v51 = vadd.f32 %v6702_v49, %v1085_v14  ;;  %v1086_v19 = vmul.f32 %v6684_v25, %v927_v30  ;;  %v7888_v14 = vld [vmem:[#allocation6_spill] sm:$0xff] }
 0x107   : > { %7883 = vst [vmem:[#allocation20_spill] sm:$0xff] %v6856_v15  ;;  %v6860_v8 = vpop.f32.mrb[15].mxu1  ;;  %v1189_v42 = vmax.f32 %v1141_v7, 0.0  ;;  %v1142_v32 = vadd.f32 %v6702_v49, %v1088_v44  ;;  %5363 = vmatmul.mubr.msk.bf16.vlgmr.msra.gmra.mrb[96].mxu0 %vm769_vm0, %v6648_v48 }
 0x108   : > { %7884 = vst [vmem:[#allocation17_spill] sm:$0xff] %v6860_v8  ;;  %v6877_v59 = vsel %vm1277_vm1, %v3752_v58, %v3755_v20  ;;  %v1187_v13 = vmax.f32 %v1139_v51, 0.0  ;;  %v1140_v7 = vadd.f32 %v6702_v49, %v1086_v19  ;;  %5411 = vmatpush3.bf16.msra.mxu0 %v6630_v57  ;;  %5366 = vmatprep.mubr.msk.bf16.mxu0 %vm769_vm0, %v6664_v21  ;;  %v3760_v51 = vshll.u32 %v6874_v45, 16 }
 0x109   : > { %5563 = vmatmul.mubr.msk.bf16.vlgmr.msra.gmra.mrb[24].mxu1 %vm769_vm0, %v6648_v48  ;;  %1237 = vst [vmem:[%s6725_s24 + $0x70] sm:$0xff] %v1189_v42  ;;  %v1190_v5 = vmax.f32 %v1142_v32, 0.0  ;;  %v7887_v48 = vld [vmem:[#allocation8_spill] sm:$0xff]  ;;  %v3757_v42 = vshrl.u32 %v6841_v62, 16  ;;  %v3764_v32 = vshrl.u32 %v6874_v45, 16 }
 0x10a   : > { %5611 = vmatpush3.bf16.msra.mxu1 %v6582_v61  ;;  %5566 = vmatprep.mubr.msk.bf16.mxu1 %vm769_vm0, %v6664_v21  ;;  %v6889_v54 = vcombine.low %v7888_v14, %v7887_v48  ;;  %1235 = vst [vmem:[%s6725_s24 + $0x60] sm:$0xff] %v1187_v13  ;;  %v1188_v44 = vmax.f32 %v1140_v7, 0.0  ;;  %v5230_v57 = vpop.f32.mrb[16].mxu0  ;;  %v3762_v21 = vrot.slane %v3760_v51, 1 }
 0x10b   : > { %1238 = vst [vmem:[%s6725_s24 + $0x78] sm:$0xff] %v1190_v5  ;;  %v1091_v61 = vmul.f32 %v5230_v57, %v6684_v25  ;;  %v940_v58 = vpop.f32.mrb[17].mxu0  ;;  %v3759_v48 = vor.u32 %v3757_v42, %v3755_v20 }
 0x10c   : > { %v6893_v30 = vpop.f32.mrb[16].mxu1  ;;  %v3767_v39 = vshll.u32 %v6889_v54, 16  ;;  %1236 = vst [vmem:[%s6725_s24 + $0x68] sm:$0xff] %v1188_v44  ;;  %v1089_v52 = vmul.f32 %v6684_v25, %v940_v58  ;;  %v5231_v13 = vpop.f32.mrb[18].mxu0  ;;  %v3766_v51 = vor.u32 %v3764_v32, %v3762_v21  ;;  %v5989_v32 = vld [vmem:[%s6124_s20 + $0x78] sm:$0xf] }
 0x10d   : > { %7889 = vst [vmem:[#allocation22_spill] sm:$0xff] %v6893_v30  ;;  %v6898_v19 = vpop.f32.mrb[17].mxu1  ;;  %v1145_v5 = vadd.f32 %v6702_v49, %v1091_v61  ;;  %v1092_v14 = vmul.f32 %v5231_v13, %v6684_v25  ;;  %v943_v57 = vpop.f32.mrb[19].mxu0  ;;  %v6913_v8 = vsel %vm1277_vm1, %v3759_v48, %v3762_v21  ;;  %v5988_v61 = vld [vmem:[%s6124_s20 + $0x74] sm:$0xf] }
 0x10e   : > { %7890 = vst [vmem:[#allocation21_spill] sm:$0xff] %v6898_v19  ;;  %v6904_v7 = vpop.f32.mrb[18].mxu1  ;;  %v3769_v30 = vrot.slane %v3767_v39, 1  ;;  %v1143_v44 = vadd.f32 %v6702_v49, %v1089_v52  ;;  %v1090_v58 = vmul.f32 %v6684_v25, %v943_v57  ;;  %v6922_v39 = vcombine.low %v5988_v61, %v5989_v32 }
 0x10f   : > { %7891 = vst [vmem:[#allocation26_spill] sm:$0xff] %v6904_v7  ;;  %v6908_v19 = vpop.f32.mrb[19].mxu1  ;;  %v1193_v20 = vmax.f32 %v1145_v5, 0.0  ;;  %v1146_v42 = vadd.f32 %v6702_v49, %v1092_v14  ;;  %5367 = vmatmul.mubr.msk.bf16.gmra.mrb[100].mxu0 %vm769_vm0, %v6669_v46  ;;  %v5991_v5 = vld [vmem:[%s6124_s20 + $0x80] sm:$0xf] }
 0x110   : > { %7892 = vst [vmem:[#allocation23_spill] sm:$0xff] %v6908_v19  ;;  %v6925_v52 = vsel %vm1277_vm1, %v3766_v51, %v3769_v30  ;;  %v1191_v21 = vmax.f32 %v1143_v44, 0.0  ;;  %v1144_v13 = vadd.f32 %v6702_v49, %v1090_v58  ;;  %5370 = vmatprep.mubr.msk.bf16.mxu0 %vm769_vm0, %v6694_v38  ;;  %v3774_v57 = vshll.u32 %v6922_v39, 16 }
 0x111   : > { %5567 = vmatmul.mubr.msk.bf16.gmra.mrb[28].mxu1 %vm769_vm0, %v6669_v46  ;;  %7893 = vst [vmem:[#allocation2_spill] sm:$0xff] %v6925_v52  ;;  %1241 = vst [vmem:[%s6725_s24 + $0x90] sm:$0xff] %v1193_v20  ;;  %v1194_v48 = vmax.f32 %v1146_v42, 0.0  ;;  %v5990_v46 = vld [vmem:[%s6124_s20 + $0x7c] sm:$0xf]  ;;  %v3771_v58 = vshrl.u32 %v6889_v54, 16 }
 0x112   : > { %5570 = vmatprep.mubr.msk.bf16.mxu1 %vm769_vm0, %v6694_v38  ;;  %v6935_v14 = vcombine.low %v5990_v46, %v5991_v5  ;;  %1239 = vst [vmem:[%s6725_s24 + $0x80] sm:$0xff] %v1191_v21  ;;  %v1192_v51 = vmax.f32 %v1144_v13, 0.0  ;;  %v5234_v44 = vpop.f32.mrb[20].mxu0  ;;  %v3776_v42 = vrot.slane %v3774_v57, 1  ;;  %v3778_v19 = vshrl.u32 %v6922_v39, 16 }
 0x113   : > { %1242 = vst [vmem:[%s6725_s24 + $0x98] sm:$0xff] %v1194_v48  ;;  %v1095_v32 = vmul.f32 %v5234_v44, %v6684_v25  ;;  %v956_v38 = vpop.f32.mrb[21].mxu0 }
 0x114   : > { %v6939_v61 = vpop.f32.mrb[20].mxu1  ;;  %v3781_v46 = vshll.u32 %v6935_v14, 16  ;;  %1240 = vst [vmem:[%s6725_s24 + $0x88] sm:$0xff] %v1192_v51  ;;  %v1093_v21 = vmul.f32 %v6684_v25, %v956_v38  ;;  %v5235_v13 = vpop.f32.mrb[22].mxu0  ;;  %v3780_v57 = vor.u32 %v3778_v19, %v3776_v42  ;;  %v5992_v19 = vld [vmem:[%s6124_s20 + $0x84] sm:$0xf] }
 0x115   : > { %7894 = vst [vmem:[#allocation27_spill] sm:$0xff] %v6939_v61  ;;  %v6944_v20 = vpop.f32.mrb[21].mxu1  ;;  %v3773_v61 = vor.u32 %v3771_v58, %v3769_v30  ;;  %v1149_v48 = vadd.f32 %v6702_v49, %v1095_v32  ;;  %v1096_v44 = vmul.f32 %v5235_v13, %v6684_v25  ;;  %v959_v7 = vpop.f32.mrb[23].mxu0  ;;  %v5993_v32 = vld [vmem:[%s6124_s20 + $0x88] sm:$0xf] }
 0x116   : > { %7895 = vst [vmem:[#allocation5_spill] sm:$0xff] %v6944_v20  ;;  %v6950_v5 = vpop.f32.mrb[22].mxu1  ;;  %v3783_v15 = vrot.slane %v3781_v46, 1  ;;  %v1147_v51 = vadd.f32 %v6702_v49, %v1093_v21  ;;  %v1094_v38 = vmul.f32 %v6684_v25, %v959_v7  ;;  %v6968_v46 = vcombine.low %v5992_v19, %v5993_v32  ;;  %v5994_v21 = vld [vmem:[%s6124_s20 + $0x8c] sm:$0xf] }
 0x117   : > { %7896 = vst [vmem:[#allocation3_spill] sm:$0xff] %v6950_v5  ;;  %v6954_v20 = vpop.f32.mrb[23].mxu1  ;;  %v6959_v52 = vsel %vm1277_vm1, %v3773_v61, %v3776_v42  ;;  %v1197_v30 = vmax.f32 %v1149_v48, 0.0  ;;  %v1150_v58 = vadd.f32 %v6702_v49, %v1096_v44  ;;  %5371 = vmatmul.mubr.msk.bf16.gmra.mrb[104].mxu0 %vm769_vm0, %v6731_v11  ;;  %v5995_v13 = vld [vmem:[%s6124_s20 + $0x90] sm:$0xf] }
 0x118   : > { %7897 = vst [vmem:[#allocation8_spill] sm:$0xff] %v6954_v20  ;;  %7898 = vst [vmem:[#allocation6_spill] sm:$0xff] %v6959_v52  ;;  %v6971_v7 = vsel %vm1277_vm1, %v3780_v57, %v3783_v15  ;;  %v1195_v61 = vmax.f32 %v1147_v51, 0.0  ;;  %v1148_v42 = vadd.f32 %v6702_v49, %v1094_v38  ;;  %5374 = vmatprep.mubr.msk.bf16.mxu0 %vm769_vm0, %v6751_v36  ;;  %v3788_v44 = vshll.u32 %v6968_v46, 16 }
 0x119   : > { %5571 = vmatmul.mubr.msk.bf16.gmra.mrb[32].mxu1 %vm769_vm0, %v6731_v11  ;;  %7899 = vst [vmem:[#allocation30_spill] sm:$0xff] %v6971_v7  ;;  %1245 = vst [vmem:[%s6725_s24 + $0xb0] sm:$0xff] %v1197_v30  ;;  %v1198_v11 = vmax.f32 %v1150_v58, 0.0  ;;  %v6981_v48 = vcombine.low %v5994_v21, %v5995_v13  ;;  %v3785_v38 = vshrl.u32 %v6935_v14, 16 }
 0x11a   : > { %5574 = vmatprep.mubr.msk.bf16.mxu1 %vm769_vm0, %v6751_v36  ;;  %1243 = vst [vmem:[%s6725_s24 + $0xa0] sm:$0xff] %v1195_v61  ;;  %v1196_v57 = vmax.f32 %v1148_v42, 0.0  ;;  %v5238_v51 = vpop.f32.mrb[24].mxu0  ;;  %v3790_v20 = vrot.slane %v3788_v44, 1  ;;  %v3792_v36 = vshrl.u32 %v6968_v46, 16 }
 0x11b   : > { %1246 = vst [vmem:[%s6725_s24 + $0xb8] sm:$0xff] %v1198_v11  ;;  %v1099_v19 = vmul.f32 %v5238_v51, %v6684_v25  ;;  %v972_v32 = vpop.f32.mrb[25].mxu0  ;;  %v3795_v30 = vshll.u32 %v6981_v48, 16  ;;  %v3787_v61 = vor.u32 %v3785_v38, %v3783_v15  ;;  %v5996_v38 = vld [vmem:[%s6124_s20 + $0x94] sm:$0xf] }
 0x11c   : > { %1244 = vst [vmem:[%s6725_s24 + $0xa8] sm:$0xff] %v1196_v57  ;;  %v1097_v58 = vmul.f32 %v6684_v25, %v972_v32  ;;  %v5239_v21 = vpop.f32.mrb[26].mxu0  ;;  %v3794_v5 = vor.u32 %v3792_v36, %v3790_v20 }
 0x11d   : > { %v1153_v42 = vadd.f32 %v6702_v49, %v1099_v19  ;;  %v1100_v13 = vmul.f32 %v5239_v21, %v6684_v25  ;;  %v975_v11 = vpop.f32.mrb[27].mxu0  ;;  %v3797_v51 = vrot.slane %v3795_v30, 1  ;;  %v6997_v57 = vsel %vm1277_vm1, %v3787_v61, %v3790_v20  ;;  %v5997_v19 = vld [vmem:[%s6124_s20 + $0x98] sm:$0xf]  ;;  %v5998_v21 = vld [vmem:[%s6124_s20 + $0x9c] sm:$0xf] }
 0x11e   : > { %v1151_v44 = vadd.f32 %v6702_v49, %v1097_v58  ;;  %v1098_v7 = vmul.f32 %v6684_v25, %v975_v11  ;;  %7900 = vst [vmem:[#allocation31_spill] sm:$0xff] %v6997_v57  ;;  %v7006_v36 = vcombine.low %v5996_v38, %v5997_v19  ;;  %v5999_v61 = vld [vmem:[%s6124_s20 + $0xa0] sm:$0xf] }
 0x11f   : > { %v1201_v32 = vmax.f32 %v1153_v42, 0.0  ;;  %v1154_v15 = vadd.f32 %v6702_v49, %v1100_v13  ;;  %5375 = vmatmul.mubr.msk.bf16.gmra.mrb[108].mxu0 %vm769_vm0, %v6782_v63  ;;  %v7009_v30 = vsel %vm1277_vm1, %v3794_v5, %v3797_v51  ;;  %v7019_v42 = vcombine.low %v5998_v21, %v5999_v61 }
 0x120   : > { %7901 = vst [vmem:[#allocation32_spill] sm:$0xff] %v7009_v30  ;;  %v1199_v20 = vmax.f32 %v1151_v44, 0.0  ;;  %v1152_v58 = vadd.f32 %v6702_v49, %v1098_v7  ;;  %5378 = vmatprep.mubr.msk.bf16.mxu0 %vm769_vm0, %v6795_v33  ;;  %v3802_v13 = vshll.u32 %v7006_v36, 16  ;;  %v3799_v7 = vshrl.u32 %v6981_v48, 16 }
 0x121   : > { %5575 = vmatmul.mubr.msk.bf16.gmra.mrb[36].mxu1 %vm769_vm0, %v6782_v63  ;;  %1249 = vst [vmem:[%s6725_s24 + $0xd0] sm:$0xff] %v1201_v32  ;;  %v1202_v63 = vmax.f32 %v1154_v15, 0.0  ;;  %v3809_v32 = vshll.u32 %v7019_v42, 16 }
 0x122   : > { %5578 = vmatprep.mubr.msk.bf16.mxu1 %vm769_vm0, %v6795_v33  ;;  %1247 = vst [vmem:[%s6725_s24 + $0xc0] sm:$0xff] %v1199_v20  ;;  %v1200_v5 = vmax.f32 %v1152_v58, 0.0  ;;  %v5242_v11 = vpop.f32.mrb[28].mxu0  ;;  %v3804_v19 = vrot.slane %v3802_v13, 1  ;;  %v3806_v33 = vshrl.u32 %v7006_v36, 16  ;;  %v3801_v20 = vor.u32 %v3799_v7, %v3797_v51 }
 0x123   : > { %1250 = vst [vmem:[%s6725_s24 + $0xd8] sm:$0xff] %v1202_v63  ;;  %v1103_v44 = vmul.f32 %v5242_v11, %v6684_v25  ;;  %v988_v38 = vpop.f32.mrb[29].mxu0  ;;  %v3811_v11 = vrot.slane %v3809_v32, 1  ;;  %v6000_v7 = vld [vmem:[%s6124_s20 + $0xa4] sm:$0xf] }
 0x124   : > { %1248 = vst [vmem:[%s6725_s24 + $0xc8] sm:$0xff] %v1200_v5  ;;  %v1101_v15 = vmul.f32 %v6684_v25, %v988_v38  ;;  %v5243_v21 = vpop.f32.mrb[30].mxu0  ;;  %v3808_v30 = vor.u32 %v3806_v33, %v3804_v19  ;;  %v7035_v5 = vsel %vm1277_vm1, %v3801_v20, %v3804_v19  ;;  %v6003_v20 = vld [vmem:[%s6124_s20 + $0xb0] sm:$0xf] }
 0x125   : > { %v1157_v58 = vadd.f32 %v6702_v49, %v1103_v44  ;;  %v1104_v61 = vmul.f32 %v5243_v21, %v6684_v25  ;;  %v991_v63 = vpop.f32.mrb[31].mxu0  ;;  %7902 = vst [vmem:[#allocation33_spill] sm:$0xff] %v7035_v5  ;;  %v6001_v44 = vld [vmem:[%s6124_s20 + $0xa8] sm:$0xf]  ;;  %v6002_v21 = vld [vmem:[%s6124_s20 + $0xac] sm:$0xf] }
 0x126   : > { %v1155_v13 = vadd.f32 %v6702_v49, %v1101_v15  ;;  %v1102_v57 = vmul.f32 %v6684_v25, %v991_v63  ;;  %v7044_v33 = vcombine.low %v6000_v7, %v6001_v44  ;;  %v7047_v32 = vsel %vm1277_vm1, %v3808_v30, %v3811_v11 }
 0x127   : > { %v1205_v38 = vmax.f32 %v1157_v58, 0.0  ;;  %v1158_v51 = vadd.f32 %v6702_v49, %v1104_v61  ;;  %5379 = vmatmul.mubr.msk.bf16.gmra.mrb[112].mxu0 %vm769_vm0, %v6828_v34  ;;  %7903 = vst [vmem:[#allocation34_spill] sm:$0xff] %v7047_v32  ;;  %v7057_v58 = vcombine.low %v6002_v21, %v6003_v20 }
 0x128   : > { %v1203_v19 = vmax.f32 %v1155_v13, 0.0  ;;  %v1156_v15 = vadd.f32 %v6702_v49, %v1102_v57  ;;  %5382 = vmatprep.mubr.msk.bf16.mxu0 %vm769_vm0, %v6841_v62  ;;  %v3816_v61 = vshll.u32 %v7044_v33, 16  ;;  %v3813_v57 = vshrl.u32 %v7019_v42, 16 }
 0x129   : > { %5579 = vmatmul.mubr.msk.bf16.gmra.mrb[40].mxu1 %vm769_vm0, %v6828_v34  ;;  %1253 = vst [vmem:[%s6725_s24 + $0xf0] sm:$0xff] %v1205_v38  ;;  %v1206_v34 = vmax.f32 %v1158_v51, 0.0  ;;  %v3823_v38 = vshll.u32 %v7057_v58, 16 }
 0x12a   : > { %5582 = vmatprep.mubr.msk.bf16.mxu1 %vm769_vm0, %v6841_v62  ;;  %1251 = vst [vmem:[%s6725_s24 + $0xe0] sm:$0xff] %v1203_v19  ;;  %v1204_v30 = vmax.f32 %v1156_v15, 0.0  ;;  %v5246_v63 = vpop.f32.mrb[32].mxu0  ;;  %v3818_v44 = vrot.slane %v3816_v61, 1  ;;  %v3820_v62 = vshrl.u32 %v7044_v33, 16  ;;  %v3815_v19 = vor.u32 %v3813_v57, %v3811_v11 }
 0x12b   : > { %1254 = vst [vmem:[%s6725_s24 + $0xf8] sm:$0xff] %v1206_v34  ;;  %v1107_v13 = vmul.f32 %v5246_v63, %v6684_v25  ;;  %v1004_v7 = vpop.f32.mrb[33].mxu0  ;;  %v3825_v63 = vrot.slane %v3823_v38, 1  ;;  %v6004_v11 = vld [vmem:[%s6124_s20 + $0xb4] sm:$0xf] }
 0x12c   : > { %1252 = vst [vmem:[%s6725_s24 + $0xe8] sm:$0xff] %v1204_v30  ;;  %v1105_v51 = vmul.f32 %v6684_v25, %v1004_v7  ;;  %v5247_v21 = vpop.f32.mrb[34].mxu0  ;;  %v3822_v32 = vor.u32 %v3820_v62, %v3818_v44  ;;  %v7073_v30 = vsel %vm1277_vm1, %v3815_v19, %v3818_v44  ;;  %v6005_v57 = vld [vmem:[%s6124_s20 + $0xb8] sm:$0xf] }
 0x12d   : > { %v1161_v15 = vadd.f32 %v6702_v49, %v1107_v13  ;;  %v1108_v20 = vmul.f32 %v5247_v21, %v6684_v25  ;;  %v1007_v34 = vpop.f32.mrb[35].mxu0  ;;  %v7082_v13 = vcombine.low %v6004_v11, %v6005_v57 }
 0x12e   : > { %v1159_v61 = vadd.f32 %v6702_v49, %v1105_v51  ;;  %v1106_v5 = vmul.f32 %v6684_v25, %v1007_v34  ;;  %v7085_v62 = vsel %vm1277_vm1, %v3822_v32, %v3825_v63  ;;  %v6006_v51 = vld [vmem:[%s6124_s20 + $0xbc] sm:$0xf] }
 0x12f   : > { %v1209_v7 = vmax.f32 %v1161_v15, 0.0  ;;  %v1162_v52 = vadd.f32 %v6702_v49, %v1108_v20  ;;  %5383 = vmatmul.mubr.msk.bf16.gmra.mrb[116].mxu0 %vm769_vm0, %v6874_v45  ;;  %7904 = vst [vmem:[#allocation35_spill] sm:$0xff] %v7085_v62  ;;  %v7095_v21 = vcombine.low %v6006_v51, %v6552_v56  ;;  %v3830_v19 = vshll.u32 %v7082_v13, 16 }
 0x130   : > { %v1207_v44 = vmax.f32 %v1159_v61, 0.0  ;;  %v1160_v38 = vadd.f32 %v6702_v49, %v1106_v5  ;;  %5386 = vmatprep.mubr.msk.bf16.mxu0 %vm769_vm0, %v6889_v54  ;;  %v3827_v5 = vshrl.u32 %v7057_v58, 16 }
 0x131   : > { %5583 = vmatmul.mubr.msk.bf16.gmra.mrb[44].mxu1 %vm769_vm0, %v6874_v45  ;;  %1257 = vst [vmem:[%s6725_s24 + $0x110] sm:$0xff] %v1209_v7  ;;  %v1210_v45 = vmax.f32 %v1162_v52, 0.0  ;;  %v3832_v61 = vrot.slane %v3830_v19, 1  ;;  %v3837_v52 = vshll.u32 %v7095_v21, 16 }
 0x132   : > { %5586 = vmatprep.mubr.msk.bf16.mxu1 %vm769_vm0, %v6889_v54  ;;  %1255 = vst [vmem:[%s6725_s24 + $0x100] sm:$0xff] %v1207_v44  ;;  %v1208_v32 = vmax.f32 %v1160_v38, 0.0  ;;  %v5250_v15 = vpop.f32.mrb[36].mxu0  ;;  %v3834_v54 = vshrl.u32 %v7082_v13, 16  ;;  %v3829_v11 = vor.u32 %v3827_v5, %v3825_v63  ;;  %v7119_v63 = vld [vmem:[%s6264_s26 + $0x4] sm:$0xff]   ;;  %s7245_s26 = scalar_lea.vmem %s7808_s6, %s6697_s19 }
 0x133   : > { %1258 = vst [vmem:[%s6725_s24 + $0x118] sm:$0xff] %v1210_v45  ;;  %v1111_v20 = vmul.f32 %v5250_v15, %v6684_v25  ;;  %v1020_v34 = vpop.f32.mrb[37].mxu0  ;;  %v3839_v51 = vrot.slane %v3837_v52, 1  ;;  %v3844_v52 = vshll.u32 %v7119_v63, 16 }
 0x134   : > { %1256 = vst [vmem:[%s6725_s24 + $0x108] sm:$0xff] %v1208_v32  ;;  %v1109_v56 = vmul.f32 %v6684_v25, %v1020_v34  ;;  %v5251_v7 = vpop.f32.mrb[38].mxu0  ;;  %v3836_v45 = vor.u32 %v3834_v54, %v3832_v61  ;;  %v7111_v32 = vsel %vm1277_vm1, %v3829_v11, %v3832_v61 }
 0x135   : > { %v1165_v57 = vadd.f32 %v6702_v49, %v1111_v20  ;;  %v1112_v44 = vmul.f32 %v5251_v7, %v6684_v25  ;;  %v1023_v38 = vpop.f32.mrb[39].mxu0  ;;  %v3841_v7 = vshrl.u32 %v7095_v21, 16 }
 0x136   : > { %v1163_v19 = vadd.f32 %v6702_v49, %v1109_v56  ;;  %v1110_v15 = vmul.f32 %v6684_v25, %v1023_v38  ;;  %v7122_v5 = vsel %vm1277_vm1, %v3836_v45, %v3839_v51 }
 0x137   : > { %v1213_v62 = vmax.f32 %v1165_v57, 0.0  ;;  %v1166_v34 = vadd.f32 %v6702_v49, %v1112_v44  ;;  %5387 = vmatmul.mubr.msk.bf16.gmra.mrb[120].mxu0 %vm769_vm0, %v6922_v39  ;;  %v7135_v44 = vrot.slane %v3844_v52, 1 }
 0x138   : > { %v1211_v20 = vmax.f32 %v1163_v19, 0.0  ;;  %v1164_v61 = vadd.f32 %v6702_v49, %v1110_v15  ;;  %5390 = vmatprep.mubr.msk.bf16.mxu0 %vm769_vm0, %v6935_v14 }
 0x139   : > { %5587 = vmatmul.mubr.msk.bf16.gmra.mrb[48].mxu1 %vm769_vm0, %v6922_v39  ;;  %1261 = vst [vmem:[%s6725_s24 + $0x130] sm:$0xff] %v1213_v62  ;;  %v1214_v54 = vmax.f32 %v1166_v34, 0.0 }
 0x13a   : > { %5590 = vmatprep.mubr.msk.bf16.mxu1 %vm769_vm0, %v6935_v14  ;;  %1259 = vst [vmem:[%s6725_s24 + $0x120] sm:$0xff] %v1211_v20  ;;  %v1212_v39 = vmax.f32 %v1164_v61, 0.0  ;;  %v5254_v56 = vpop.f32.mrb[40].mxu0  ;;  %v3843_v14 = vor.u32 %v3841_v7, %v3839_v51 }
 0x13b   : > { %1262 = vst [vmem:[%s6725_s24 + $0x138] sm:$0xff] %v1214_v54  ;;  %v1115_v11 = vmul.f32 %v5254_v56, %v6684_v25  ;;  %v1036_v57 = vpop.f32.mrb[41].mxu0 }
 0x13c   : > { %1260 = vst [vmem:[%s6725_s24 + $0x128] sm:$0xff] %v1212_v39  ;;  %v1113_v38 = vmul.f32 %v6684_v25, %v1036_v57  ;;  %v5255_v45 = vpop.f32.mrb[42].mxu0  ;;  %v7145_v61 = vsel %vm1277_vm1, %v3843_v14, %v7135_v44 }
 0x13d   : > { %v1169_v62 = vadd.f32 %v6702_v49, %v1115_v11  ;;  %v1116_v19 = vmul.f32 %v5255_v45, %v6684_v25  ;;  %v1039_v15 = vpop.f32.mrb[43].mxu0 }
 0x13e   : > { %v1167_v34 = vadd.f32 %v6702_v49, %v1113_v38  ;;  %v1114_v20 = vmul.f32 %v6684_v25, %v1039_v15 }
 0x13f   : > { %v1217_v54 = vmax.f32 %v1169_v62, 0.0  ;;  %v1170_v52 = vadd.f32 %v6702_v49, %v1116_v19  ;;  %5391 = vmatmul.mubr.msk.bf16.gmra.mrb[124].mxu0 %vm769_vm0, %v6968_v46 }
 0x140   : > { %v1215_v51 = vmax.f32 %v1167_v34, 0.0  ;;  %v1168_v39 = vadd.f32 %v6702_v49, %v1114_v20  ;;  %5394 = vmatprep.mubr.msk.bf16.mxu0 %vm769_vm0, %v6981_v48 }
 0x141   : > { %5591 = vmatmul.mubr.msk.bf16.gmra.mrb[52].mxu1 %vm769_vm0, %v6968_v46  ;;  %1265 = vst [vmem:[%s6725_s24 + $0x150] sm:$0xff] %v1217_v54  ;;  %v1218_v56 = vmax.f32 %v1170_v52, 0.0 }
 0x142   : > { %5594 = vmatprep.mubr.msk.bf16.mxu1 %vm769_vm0, %v6981_v48  ;;  %1263 = vst [vmem:[%s6725_s24 + $0x140] sm:$0xff] %v1215_v51  ;;  %v1216_v7 = vmax.f32 %v1168_v39, 0.0  ;;  %v5258_v11 = vpop.f32.mrb[44].mxu0 }
 0x143   : > { %1266 = vst [vmem:[%s6725_s24 + $0x158] sm:$0xff] %v1218_v56  ;;  %v1119_v57 = vmul.f32 %v5258_v11, %v6684_v25  ;;  %v1052_v38 = vpop.f32.mrb[45].mxu0 }
 0x144   : > { %1264 = vst [vmem:[%s6725_s24 + $0x148] sm:$0xff] %v1216_v7  ;;  %v1117_v46 = vmul.f32 %v6684_v25, %v1052_v38  ;;  %v5259_v45 = vpop.f32.mrb[46].mxu0 }
 0x145   : > { %v1173_v14 = vadd.f32 %v6702_v49, %v1119_v57  ;;  %v1120_v62 = vmul.f32 %v5259_v45, %v6684_v25  ;;  %v1055_v48 = vpop.f32.mrb[47].mxu0 }
 0x146   : > { %v1171_v19 = vadd.f32 %v6702_v49, %v1117_v46  ;;  %v1118_v15 = vmul.f32 %v6684_v25, %v1055_v48  ;;  %v7286_v46 = vld [vmem:[%s7806_s4] ss:$0 sm:$0xff] }
 0x147   : > { %v1221_v34 = vmax.f32 %v1173_v14, 0.0  ;;  %v1174_v20 = vadd.f32 %v6702_v49, %v1120_v62  ;;  %5395 = vmatmul.mubr.msk.bf16.gmra.mrb[128].mxu0 %vm769_vm0, %v7006_v36 }
 0x148   : > { %v1219_v54 = vmax.f32 %v1171_v19, 0.0  ;;  %v1172_v52 = vadd.f32 %v6702_v49, %v1118_v15  ;;  %5398 = vmatprep.mubr.msk.bf16.mxu0 %vm769_vm0, %v7019_v42 }
 0x149   : > { %5595 = vmatmul.mubr.msk.bf16.gmra.mrb[56].mxu1 %vm769_vm0, %v7006_v36  ;;  %1269 = vst [vmem:[%s6725_s24 + $0x170] sm:$0xff] %v1221_v34  ;;  %v1222_v51 = vmax.f32 %v1174_v20, 0.0  ;;  %v6007_v36 = vld [vmem:[%s6124_s20] sm:$0xff]  }
 0x14a   : > { %5598 = vmatprep.mubr.msk.bf16.mxu1 %vm769_vm0, %v7019_v42  ;;  %1267 = vst [vmem:[%s6725_s24 + $0x160] sm:$0xff] %v1219_v54  ;;  %v1220_v39 = vmax.f32 %v1172_v52, 0.0  ;;  %v7905_v52 = vld [vmem:[#allocation12_spill] sm:$0xff] }
 0x14b   : > { %1270 = vst [vmem:[%s6725_s24 + $0x178] sm:$0xff] %v1222_v51 }
 0x14c   : > { %1268 = vst [vmem:[%s6725_s24 + $0x168] sm:$0xff] %v1220_v39 }
 0x14f   : > { %5399 = vmatmul.mubr.msk.bf16.gmra.mrb[132].mxu0 %vm769_vm0, %v7044_v33 }
 0x150   : > { %5402 = vmatprep.mubr.msk.bf16.mxu0 %vm769_vm0, %v7057_v58 }
 0x151   : > { %5599 = vmatmul.mubr.msk.bf16.gmra.mrb[60].mxu1 %vm769_vm0, %v7044_v33 }
 0x152   : > { %5602 = vmatprep.mubr.msk.bf16.mxu1 %vm769_vm0, %v7057_v58 }
 0x157   : > { %5403 = vmatmul.mubr.msk.bf16.gmra.mrb[136].mxu0 %vm769_vm0, %v7082_v13 }
 0x158   : > { %5406 = vmatprep.mubr.msk.bf16.mxu0 %vm769_vm0, %v7095_v21 }
 0x159   : > { %5603 = vmatmul.mubr.msk.bf16.gmra.mrb[64].mxu1 %vm769_vm0, %v7082_v13 }
 0x15a   : > { %5606 = vmatprep.mubr.msk.bf16.mxu1 %vm769_vm0, %v7095_v21 }
 0x15f   : > { %5407 = vmatmul.mubr.msk.bf16.gmra.mrb[140].mxu0 %vm769_vm0, %v7119_v63 }
 0x160   : > { %5412 = vmatprep.mubr.msk.bf16.mxu0 %vm769_vm0, %v6007_v36  ;;  %v7906_v36 = vld [vmem:[#allocation28_spill] sm:$0xff] }
 0x161   : > { %5607 = vmatmul.mubr.msk.bf16.gmra.mrb[68].mxu1 %vm769_vm0, %v7119_v63 }
 0x162   : > { %5612 = vmatprep.mubr.msk.bf16.mxu1 %vm769_vm0, %v6672_v28 }
 0x167   : > { %5413 = vmatmul.mubr.msk.bf16.vlgmr.msra.gmra.mrb[96].mxu0 %vm769_vm0, %v6152_v12 }
 0x168   : > { %5416 = vmatprep.mubr.msk.bf16.mxu0 %vm769_vm0, %v6171_v17 }
 0x169   : > { %5613 = vmatmul.mubr.msk.bf16.vlgmr.msra.gmra.mrb[24].mxu1 %vm769_vm0, %v6679_v22 }
 0x16a   : > { %5616 = vmatprep.mubr.msk.bf16.mxu1 %vm769_vm0, %v6715_v27 }
 0x16f   : > { %5417 = vmatmul.mubr.msk.bf16.gmra.mrb[100].mxu0 %vm769_vm0, %v6210_v29 }
 0x170   : > { %5420 = vmatprep.mubr.msk.bf16.mxu0 %vm769_vm0, %v6216_v31 }
 0x171   : > { %5617 = vmatmul.mubr.msk.bf16.gmra.mrb[28].mxu1 %vm769_vm0, %v6739_v47 }
 0x172   : > { %5620 = vmatprep.mubr.msk.bf16.mxu1 %vm769_vm0, %v6767_v1 }
 0x177   : > { %5421 = vmatmul.mubr.msk.bf16.gmra.mrb[104].mxu0 %vm769_vm0, %v6246_v41 }
 0x178   : > { %5424 = vmatprep.mubr.msk.bf16.mxu0 %vm769_vm0, %v6254_v43 }
 0x179   : > { %5621 = vmatmul.mubr.msk.bf16.gmra.mrb[32].mxu1 %vm769_vm0, %v6785_v16 }
 0x17a   : > { %5624 = vmatprep.mubr.msk.bf16.mxu1 %vm769_vm0, %v6819_v23  ;;  %v5288_v12 = vpop.f32.mrb[72].mxu0 }
 0x17b   : > { %v1922_v17 = vadd.f32 %v6704_v2, %v5288_v12  ;;  %v1682_v29 = vpop.f32.mrb[73].mxu0 }
 0x17c   : > { %v1914_v31 = vadd.f32 %v6707_v60, %v1682_v29  ;;  %v5289_v28 = vpop.f32.mrb[74].mxu0  ;;  %v7909_v29 = vld [vmem:[#allocation6_spill] sm:$0xff] }
 0x17d   : > { %v2034_v22 = vmul.f32 %v6684_v25, %v1922_v17  ;;  %v1925_v41 = vadd.f32 %v6712_v10, %v5289_v28  ;;  %v1685_v27 = vpop.f32.mrb[75].mxu0  ;;  %v7908_v17 = vld [vmem:[#allocation4_spill] sm:$0xff] }
 0x17e   : > { %v2032_v47 = vmul.f32 %v6684_v25, %v1914_v31  ;;  %v1917_v43 = vadd.f32 %v6719_v40, %v1685_v27 }
 0x17f   : > { %v2082_v1 = vadd.f32 %v6702_v49, %v2034_v22  ;;  %v2035_v16 = vmul.f32 %v6684_v25, %v1925_v41  ;;  %5425 = vmatmul.mubr.msk.bf16.gmra.mrb[108].mxu0 %vm769_vm0, %v6289_v53 }
 0x180   : > { %v2080_v2 = vadd.f32 %v6702_v49, %v2032_v47  ;;  %v2033_v60 = vmul.f32 %v6684_v25, %v1917_v43  ;;  %5428 = vmatprep.mubr.msk.bf16.mxu0 %vm769_vm0, %v6295_v55  ;;  %v7910_v43 = vld [vmem:[#allocation16_spill] sm:$0xff] }
 0x181   : > { %5625 = vmatmul.mubr.msk.bf16.gmra.mrb[36].mxu1 %vm769_vm0, %v6831_v9  ;;  %v2130_v53 = vmax.f32 %v2082_v1, 0.0  ;;  %v2083_v10 = vadd.f32 %v6702_v49, %v2035_v16 }
 0x182   : > { %5628 = vmatprep.mubr.msk.bf16.mxu1 %vm769_vm0, %v6865_v4  ;;  %v2128_v40 = vmax.f32 %v2080_v2, 0.0  ;;  %v2081_v23 = vadd.f32 %v6702_v49, %v2033_v60  ;;  %v5292_v9 = vpop.f32.mrb[76].mxu0  ;;  %v7911_v60 = vld [vmem:[#allocation15_spill] sm:$0xff] }
 0x183   : > { %2178 = vst [vmem:[%s7245_s26 + $0xd0] sm:$0xff] %v2130_v53  ;;  %v2131_v42 = vmax.f32 %v2083_v10, 0.0  ;;  %v1938_v33 = vadd.f32 %v6754_v50, %v5292_v9  ;;  %v1698_v58 = vpop.f32.mrb[77].mxu0 }
 0x184   : > { %2176 = vst [vmem:[%s7245_s26 + $0xc0] sm:$0xff] %v2128_v40  ;;  %v2129_v13 = vmax.f32 %v2081_v23, 0.0  ;;  %v1930_v55 = vadd.f32 %v6758_v24, %v1698_v58  ;;  %v5293_v21 = vpop.f32.mrb[78].mxu0  ;;  %v7912_v23 = vld [vmem:[#allocation20_spill] sm:$0xff]  ;;  %v7913_v58 = vld [vmem:[#allocation17_spill] sm:$0xff] }
 0x185   : > { %2179 = vst [vmem:[%s7245_s26 + $0xd8] sm:$0xff] %v2131_v42  ;;  %v2038_v4 = vmul.f32 %v6684_v25, %v1938_v33  ;;  %v1941_v56 = vadd.f32 %v6764_v0, %v5293_v21  ;;  %v1701_v7 = vpop.f32.mrb[79].mxu0  ;;  %v7275_v0 = vld [vmem:[%s7805_s3] ss:$0 sm:$0xff] }
 0x186   : > { %2177 = vst [vmem:[%s7245_s26 + $0xc8] sm:$0xff] %v2129_v13  ;;  %v2036_v11 = vmul.f32 %v6684_v25, %v1930_v55  ;;  %v1933_v57 = vadd.f32 %v6771_v6, %v1701_v7 }
 0x187   : > { %v2086_v50 = vadd.f32 %v6702_v49, %v2038_v4  ;;  %v2039_v38 = vmul.f32 %v6684_v25, %v1941_v56  ;;  %5429 = vmatmul.mubr.msk.bf16.gmra.mrb[112].mxu0 %vm769_vm0, %v6326_v3  ;;  %v7914_v4 = vld [vmem:[#allocation7_spill] sm:$0xff]  ;;  %v7915_v56 = vld [vmem:[#allocation30_spill] sm:$0xff] }
 0x188   : > { %v2084_v24 = vadd.f32 %v6702_v49, %v2036_v11  ;;  %v2037_v6 = vmul.f32 %v7275_v0, %v1933_v57  ;;  %5432 = vmatprep.mubr.msk.bf16.mxu0 %vm769_vm0, %v6332_v18  ;;  %v7916_v57 = vld [vmem:[#allocation9_spill] sm:$0xff] }
 0x189   : > { %5629 = vmatmul.mubr.msk.bf16.gmra.mrb[40].mxu1 %vm769_vm0, %v6877_v59  ;;  %v2134_v3 = vmax.f32 %v2086_v50, 0.0  ;;  %v2087_v25 = vadd.f32 %v6702_v49, %v2039_v38  ;;  %v7917_v50 = vld [vmem:[#allocation31_spill] sm:$0xff] }
 0x18a   : > { %5632 = vmatprep.mubr.msk.bf16.mxu1 %vm769_vm0, %v6913_v8  ;;  %v2132_v59 = vmax.f32 %v2084_v24, 0.0  ;;  %v2085_v45 = vadd.f32 %v7286_v46, %v2037_v6  ;;  %v5296_v14 = vpop.f32.mrb[80].mxu0 }
 0x18b   : > { %2182 = vst [vmem:[%s7245_s26 + $0xf0] sm:$0xff] %v2134_v3  ;;  %v2135_v62 = vmax.f32 %v2087_v25, 0.0  ;;  %v1954_v18 = vadd.f32 %v6799_v35, %v5296_v14  ;;  %v1714_v48 = vpop.f32.mrb[81].mxu0 }
 0x18c   : > { %2180 = vst [vmem:[%s7245_s26 + $0xe0] sm:$0xff] %v2132_v59  ;;  %v2133_v8 = vmax.f32 %v2085_v45, 0.0  ;;  %v1946_v19 = vadd.f32 %v6804_v37, %v1714_v48  ;;  %v5297_v49 = vpop.f32.mrb[82].mxu0  ;;  %v7907_v37 = vld [vmem:[#allocation2_spill] sm:$0xff]  ;;  %v7919_v48 = vld [vmem:[#allocation21_spill] sm:$0xff] }
 0x18d   : > { %2183 = vst [vmem:[%s7245_s26 + $0xf8] sm:$0xff] %v2135_v62  ;;  %v2042_v15 = vmul.f32 %v7275_v0, %v1954_v18  ;;  %v1957_v34 = vadd.f32 %v6810_v26, %v5297_v49  ;;  %v1717_v20 = vpop.f32.mrb[83].mxu0  ;;  %v7918_v45 = vld [vmem:[#allocation22_spill] sm:$0xff] }
 0x18e   : > { %2181 = vst [vmem:[%s7245_s26 + $0xe8] sm:$0xff] %v2133_v8  ;;  %v2040_v54 = vmul.f32 %v7275_v0, %v1946_v19  ;;  %v1949_v51 = vadd.f32 %v7905_v52, %v1717_v20  ;;  %v7921_v52 = vld [vmem:[#allocation23_spill] sm:$0xff] }
 0x18f   : > { %v2090_v35 = vadd.f32 %v7286_v46, %v2042_v15  ;;  %v2043_v39 = vmul.f32 %v7275_v0, %v1957_v34  ;;  %5433 = vmatmul.mubr.msk.bf16.gmra.mrb[116].mxu0 %vm769_vm0, %v7906_v36  ;;  %v7920_v15 = vld [vmem:[#allocation26_spill] sm:$0xff] }
 0x190   : > { %v2088_v26 = vadd.f32 %v7286_v46, %v2040_v54  ;;  %v2041_v12 = vmul.f32 %v7275_v0, %v1949_v51  ;;  %5436 = vmatprep.mubr.msk.bf16.mxu0 %vm769_vm0, %v7908_v17  ;;  %v7922_v36 = vld [vmem:[#allocation10_spill] sm:$0xff]  ;;  %v7924_v17 = vld [vmem:[#allocation11_spill] sm:$0xff] }
 0x191   : > { %5633 = vmatmul.mubr.msk.bf16.gmra.mrb[44].mxu1 %vm769_vm0, %v7907_v37  ;;  %v2138_v31 = vmax.f32 %v2090_v35, 0.0  ;;  %v2091_v28 = vadd.f32 %v7286_v46, %v2043_v39  ;;  %v7923_v37 = vld [vmem:[#allocation32_spill] sm:$0xff] }
 0x192   : > { %5636 = vmatprep.mubr.msk.bf16.mxu1 %vm769_vm0, %v7909_v29  ;;  %v2136_v22 = vmax.f32 %v2088_v26, 0.0  ;;  %v2089_v41 = vadd.f32 %v7286_v46, %v2041_v12  ;;  %v5300_v27 = vpop.f32.mrb[84].mxu0  ;;  %v7925_v29 = vld [vmem:[#allocation33_spill] sm:$0xff] }
 0x193   : > { %2186 = vst [vmem:[%s7245_s26 + $0x110] sm:$0xff] %v2138_v31  ;;  %v2139_v47 = vmax.f32 %v2091_v28, 0.0  ;;  %v1970_v1 = vadd.f32 %v7910_v43, %v5300_v27  ;;  %v1730_v16 = vpop.f32.mrb[85].mxu0  ;;  %v7926_v43 = vld [vmem:[#allocation27_spill] sm:$0xff] }
 0x194   : > { %2184 = vst [vmem:[%s7245_s26 + $0x100] sm:$0xff] %v2136_v22  ;;  %v2137_v2 = vmax.f32 %v2089_v41, 0.0  ;;  %v1962_v53 = vadd.f32 %v7911_v60, %v1730_v16  ;;  %v5301_v10 = vpop.f32.mrb[86].mxu0  ;;  %v7927_v60 = vld [vmem:[#allocation5_spill] sm:$0xff] }
 0x195   : > { %2187 = vst [vmem:[%s7245_s26 + $0x118] sm:$0xff] %v2139_v47  ;;  %v2046_v40 = vmul.f32 %v7275_v0, %v1970_v1  ;;  %v1973_v9 = vadd.f32 %v7912_v23, %v5301_v10  ;;  %v1733_v42 = vpop.f32.mrb[87].mxu0  ;;  %v7928_v23 = vld [vmem:[#allocation3_spill] sm:$0xff] }
 0x196   : > { %2185 = vst [vmem:[%s7245_s26 + $0x108] sm:$0xff] %v2137_v2  ;;  %v2044_v33 = vmul.f32 %v7275_v0, %v1962_v53  ;;  %v1965_v13 = vadd.f32 %v7913_v58, %v1733_v42  ;;  %v7929_v58 = vld [vmem:[#allocation8_spill] sm:$0xff] }
 0x197   : > { %v2094_v55 = vadd.f32 %v7286_v46, %v2046_v40  ;;  %v2047_v21 = vmul.f32 %v7275_v0, %v1973_v9  ;;  %5437 = vmatmul.mubr.msk.bf16.gmra.mrb[120].mxu0 %vm769_vm0, %v7914_v4  ;;  %v7930_v4 = vld [vmem:[#allocation13_spill] sm:$0xff] }
 0x198   : > { %v2092_v7 = vadd.f32 %v7286_v46, %v2044_v33  ;;  %v2045_v11 = vmul.f32 %v7275_v0, %v1965_v13  ;;  %5440 = vmatprep.mubr.msk.bf16.mxu0 %vm769_vm0, %v7916_v57  ;;  %v7932_v57 = vld [vmem:[#allocation14_spill] sm:$0xff] }
 0x199   : > { %5637 = vmatmul.mubr.msk.bf16.gmra.mrb[48].mxu1 %vm769_vm0, %v7915_v56  ;;  %v2142_v38 = vmax.f32 %v2094_v55, 0.0  ;;  %v2095_v24 = vadd.f32 %v7286_v46, %v2047_v21  ;;  %v7931_v56 = vld [vmem:[#allocation34_spill] sm:$0xff] }
 0x19a   : > { %5640 = vmatprep.mubr.msk.bf16.mxu1 %vm769_vm0, %v7917_v50  ;;  %v2140_v6 = vmax.f32 %v2092_v7, 0.0  ;;  %v2093_v3 = vadd.f32 %v7286_v46, %v2045_v11  ;;  %v5304_v25 = vpop.f32.mrb[88].mxu0 }
 0x19b   : > { %2190 = vst [vmem:[%s7245_s26 + $0x130] sm:$0xff] %v2142_v38  ;;  %v2143_v59 = vmax.f32 %v2095_v24, 0.0  ;;  %v1986_v14 = vadd.f32 %v7918_v45, %v5304_v25  ;;  %v1746_v62 = vpop.f32.mrb[89].mxu0 }
 0x19c   : > { %2188 = vst [vmem:[%s7245_s26 + $0x120] sm:$0xff] %v2140_v6  ;;  %v2141_v18 = vmax.f32 %v2093_v3, 0.0  ;;  %v1978_v8 = vadd.f32 %v7919_v48, %v1746_v62  ;;  %v5305_v19 = vpop.f32.mrb[90].mxu0 }
 0x19d   : > { %2191 = vst [vmem:[%s7245_s26 + $0x138] sm:$0xff] %v2143_v59  ;;  %v2050_v49 = vmul.f32 %v7275_v0, %v1986_v14  ;;  %v1989_v34 = vadd.f32 %v7920_v15, %v5305_v19  ;;  %v1749_v20 = vpop.f32.mrb[91].mxu0 }
 0x19e   : > { %2189 = vst [vmem:[%s7245_s26 + $0x128] sm:$0xff] %v2141_v18  ;;  %v2048_v54 = vmul.f32 %v7275_v0, %v1978_v8  ;;  %v1981_v51 = vadd.f32 %v7921_v52, %v1749_v20  ;;  %v7933_v20 = vld [vmem:[#allocation18_spill] sm:$0xff] }
 0x19f   : > { %v2098_v35 = vadd.f32 %v7286_v46, %v2050_v49  ;;  %v2051_v39 = vmul.f32 %v7275_v0, %v1989_v34  ;;  %5441 = vmatmul.mubr.msk.bf16.gmra.mrb[124].mxu0 %vm769_vm0, %v7922_v36 }
 0x1a0   : > { %v2096_v26 = vadd.f32 %v7286_v46, %v2048_v54  ;;  %v2049_v12 = vmul.f32 %v7275_v0, %v1981_v51  ;;  %5444 = vmatprep.mubr.msk.bf16.mxu0 %vm769_vm0, %v7924_v17  ;;  %v7934_v54 = vld [vmem:[#allocation35_spill] sm:$0xff] }
 0x1a1   : > { %5641 = vmatmul.mubr.msk.bf16.gmra.mrb[52].mxu1 %vm769_vm0, %v7923_v37  ;;  %v2146_v31 = vmax.f32 %v2098_v35, 0.0  ;;  %v2099_v28 = vadd.f32 %v7286_v46, %v2051_v39  ;;  %v7935_v35 = vld [vmem:[#allocation19_spill] sm:$0xff] }
 0x1a2   : > { %5644 = vmatprep.mubr.msk.bf16.mxu1 %vm769_vm0, %v7925_v29  ;;  %v2144_v22 = vmax.f32 %v2096_v26, 0.0  ;;  %v2097_v41 = vadd.f32 %v7286_v46, %v2049_v12  ;;  %v5308_v27 = vpop.f32.mrb[92].mxu0 }
 0x1a3   : > { %2194 = vst [vmem:[%s7245_s26 + $0x150] sm:$0xff] %v2146_v31  ;;  %v2147_v47 = vmax.f32 %v2099_v28, 0.0  ;;  %v2002_v1 = vadd.f32 %v7926_v43, %v5308_v27  ;;  %v1762_v16 = vpop.f32.mrb[93].mxu0  ;;  %v3848_v31 = vshrl.u32 %v7119_v63, 16 }
 0x1a4   : > { %2192 = vst [vmem:[%s7245_s26 + $0x140] sm:$0xff] %v2144_v22  ;;  %v2145_v2 = vmax.f32 %v2097_v41, 0.0  ;;  %v1994_v53 = vadd.f32 %v7927_v60, %v1762_v16  ;;  %v5309_v10 = vpop.f32.mrb[94].mxu0 }
 0x1a5   : > { %2195 = vst [vmem:[%s7245_s26 + $0x158] sm:$0xff] %v2147_v47  ;;  %v2054_v40 = vmul.f32 %v7275_v0, %v2002_v1  ;;  %v2005_v9 = vadd.f32 %v7928_v23, %v5309_v10  ;;  %v1765_v42 = vpop.f32.mrb[95].mxu0  ;;  %v7936_v1 = vld [vmem:[#allocation24_spill] sm:$0xff]  ;;  %v3850_v60 = vor.u32 %v3848_v31, %v7135_v44 }
 0x1a6   : > { %2193 = vst [vmem:[%s7245_s26 + $0x148] sm:$0xff] %v2145_v2  ;;  %v2052_v33 = vmul.f32 %v7275_v0, %v1994_v53  ;;  %v1997_v13 = vadd.f32 %v7929_v58, %v1765_v42  ;;  %v7937_v2 = vld [vmem:[#allocation25_spill] sm:$0xff]  ;;  %v6036_v53 = vmov 0  }
 0x1a7   : > { %v2102_v55 = vadd.f32 %v7286_v46, %v2054_v40  ;;  %v2055_v21 = vmul.f32 %v7275_v0, %v2005_v9  ;;  %5445 = vmatmul.mubr.msk.bf16.gmra.mrb[128].mxu0 %vm769_vm0, %v7930_v4  ;;  %v3854_v10 = vrot.slane %v6036_v53, 1 }
 0x1a8   : > { %v2100_v7 = vadd.f32 %v7286_v46, %v2052_v33  ;;  %v2053_v11 = vmul.f32 %v7275_v0, %v1997_v13  ;;  %5448 = vmatprep.mubr.msk.bf16.mxu0 %vm769_vm0, %v7932_v57 }
 0x1a9   : > { %5645 = vmatmul.mubr.msk.bf16.gmra.mrb[56].mxu1 %vm769_vm0, %v7931_v56  ;;  %v2150_v50 = vmax.f32 %v2102_v55, 0.0  ;;  %v2103_v38 = vadd.f32 %v7286_v46, %v2055_v21 }
 0x1aa   : > { %5648 = vmatprep.mubr.msk.bf16.mxu1 %vm769_vm0, %v7073_v30  ;;  %v2148_v24 = vmax.f32 %v2100_v7, 0.0  ;;  %v2101_v6 = vadd.f32 %v7286_v46, %v2053_v11  ;;  %v5314_v3 = vpop.f32.mrb[48].mxu0  ;;  %v7938_v11 = vld [vmem:[#allocation29_spill] sm:$0xff] }
 0x1ab   : > { %2198 = vst [vmem:[%s7245_s26 + $0x170] sm:$0xff] %v2150_v50  ;;  %v2151_v25 = vmax.f32 %v2103_v38, 0.0  ;;  %v2010_v59 = vmul.f32 %v7275_v0, %v5314_v3  ;;  %v1817_v45 = vpop.f32.mrb[49].mxu0 }
 0x1ac   : > { %2196 = vst [vmem:[%s7245_s26 + $0x160] sm:$0xff] %v2148_v24  ;;  %v2149_v14 = vmax.f32 %v2101_v6, 0.0  ;;  %v2008_v62 = vmul.f32 %v7275_v0, %v1817_v45  ;;  %v5315_v18 = vpop.f32.mrb[50].mxu0 }
 0x1ad   : > { %2199 = vst [vmem:[%s7245_s26 + $0x178] sm:$0xff] %v2151_v25  ;;  %v2058_v30 = vadd.f32 %v7286_v46, %v2010_v59  ;;  %v2011_v48 = vmul.f32 %v7275_v0, %v5315_v18  ;;  %v1820_v8 = vpop.f32.mrb[51].mxu0 }
 0x1ae   : > { %2197 = vst [vmem:[%s7245_s26 + $0x168] sm:$0xff] %v2149_v14  ;;  %v2056_v19 = vadd.f32 %v7286_v46, %v2008_v62  ;;  %v2009_v49 = vmul.f32 %v7275_v0, %v1820_v8 }
 0x1af   : > { %v2106_v15 = vmax.f32 %v2058_v30, 0.0  ;;  %v2059_v34 = vadd.f32 %v7286_v46, %v2011_v48  ;;  %5449 = vmatmul.mubr.msk.bf16.gmra.mrb[132].mxu0 %vm769_vm0, %v7933_v20 }
 0x1b0   : > { %v2104_v52 = vmax.f32 %v2056_v19, 0.0  ;;  %v2057_v51 = vadd.f32 %v7286_v46, %v2009_v49  ;;  %5452 = vmatprep.mubr.msk.bf16.mxu0 %vm769_vm0, %v7935_v35 }
 0x1b1   : > { %5649 = vmatmul.mubr.msk.bf16.gmra.mrb[60].mxu1 %vm769_vm0, %v7934_v54  ;;  %2154 = vst [vmem:[%s7245_s26 + $0x10] sm:$0xff] %v2106_v15  ;;  %v2107_v39 = vmax.f32 %v2059_v34, 0.0 }
 0x1b2   : > { %5652 = vmatprep.mubr.msk.bf16.mxu1 %vm769_vm0, %v7111_v32  ;;  %2152 = vst [vmem:[%s7245_s26] sm:$0xff] %v2104_v52  ;;  %v2105_v36 = vmax.f32 %v2057_v51, 0.0  ;;  %v5318_v37 = vpop.f32.mrb[52].mxu0 }
 0x1b3   : > { %2155 = vst [vmem:[%s7245_s26 + $0x18] sm:$0xff] %v2107_v39  ;;  %v2014_v26 = vmul.f32 %v7275_v0, %v5318_v37  ;;  %v1833_v12 = vpop.f32.mrb[53].mxu0 }
 0x1b4   : > { %2153 = vst [vmem:[%s7245_s26 + $0x8] sm:$0xff] %v2105_v36  ;;  %v2012_v17 = vmul.f32 %v7275_v0, %v1833_v12  ;;  %v5319_v29 = vpop.f32.mrb[54].mxu0 }
 0x1b5   : > { %v2062_v28 = vadd.f32 %v7286_v46, %v2014_v26  ;;  %v2015_v32 = vmul.f32 %v7275_v0, %v5319_v29  ;;  %v1836_v22 = vpop.f32.mrb[55].mxu0 }
 0x1b6   : > { %v2060_v41 = vadd.f32 %v7286_v46, %v2012_v17  ;;  %v2013_v27 = vmul.f32 %v7275_v0, %v1836_v22 }
 0x1b7   : > { %v2110_v47 = vmax.f32 %v2062_v28, 0.0  ;;  %v2063_v43 = vadd.f32 %v7286_v46, %v2015_v32  ;;  %5453 = vmatmul.mubr.msk.bf16.gmra.mrb[136].mxu0 %vm769_vm0, %v7936_v1 }
 0x1b8   : > { %v2108_v63 = vmax.f32 %v2060_v41, 0.0  ;;  %v2061_v16 = vadd.f32 %v7286_v46, %v2013_v27  ;;  %5456 = vmatprep.mubr.msk.bf16.mxu0 %vm769_vm0, %v7937_v2 }
 0x1b9   : > { %5653 = vmatmul.mubr.msk.bf16.gmra.mrb[64].mxu1 %vm769_vm0, %v7122_v5  ;;  %2158 = vst [vmem:[%s7245_s26 + $0x30] sm:$0xff] %v2110_v47  ;;  %v2111_v40 = vmax.f32 %v2063_v43, 0.0 }
 0x1ba   : > { %5656 = vmatprep.mubr.msk.bf16.mxu1 %vm769_vm0, %v7145_v61  ;;  %2156 = vst [vmem:[%s7245_s26 + $0x20] sm:$0xff] %v2108_v63  ;;  %v2109_v23 = vmax.f32 %v2061_v16, 0.0  ;;  %v5322_v9 = vpop.f32.mrb[56].mxu0  ;;  %v3855_v61 = vsel %vm1277_vm1, %v3850_v60, %v3854_v10 }
 0x1bb   : > { %2159 = vst [vmem:[%s7245_s26 + $0x38] sm:$0xff] %v2111_v40  ;;  %v2018_v5 = vmul.f32 %v7275_v0, %v5322_v9  ;;  %v1849_v42 = vpop.f32.mrb[57].mxu0 }
 0x1bc   : > { %2157 = vst [vmem:[%s7245_s26 + $0x28] sm:$0xff] %v2109_v23  ;;  %v2016_v33 = vmul.f32 %v7275_v0, %v1849_v42  ;;  %v5323_v58 = vpop.f32.mrb[58].mxu0 }
 0x1bd   : > { %v2066_v44 = vadd.f32 %v7286_v46, %v2018_v5  ;;  %v2019_v13 = vmul.f32 %v7275_v0, %v5323_v58  ;;  %v1852_v55 = vpop.f32.mrb[59].mxu0 }
 0x1be   : > { %v2064_v21 = vadd.f32 %v7286_v46, %v2016_v33  ;;  %v2017_v4 = vmul.f32 %v7275_v0, %v1852_v55 }
 0x1bf   : > { %v2114_v56 = vmax.f32 %v2066_v44, 0.0  ;;  %v2067_v7 = vadd.f32 %v7286_v46, %v2019_v13  ;;  %5457 = vmatmul.mubr.msk.bf16.gmra.mrb[140].mxu0 %vm769_vm0, %v7938_v11 }
 0x1c0   : > { %v2112_v57 = vmax.f32 %v2064_v21, 0.0  ;;  %v2065_v50 = vadd.f32 %v7286_v46, %v2017_v4 }
 0x1c1   : > { %5657 = vmatmul.mubr.msk.bf16.gmra.mrb[68].mxu1 %vm769_vm0, %v3855_v61  ;;  %2162 = vst [vmem:[%s7245_s26 + $0x50] sm:$0xff] %v2114_v56  ;;  %v2115_v38 = vmax.f32 %v2067_v7, 0.0 }
 0x1c2   : > { %2160 = vst [vmem:[%s7245_s26 + $0x40] sm:$0xff] %v2112_v57  ;;  %v2113_v24 = vmax.f32 %v2065_v50, 0.0  ;;  %v5326_v6 = vpop.f32.mrb[60].mxu0 }
 0x1c3   : > { %2163 = vst [vmem:[%s7245_s26 + $0x58] sm:$0xff] %v2115_v38  ;;  %v2022_v3 = vmul.f32 %v7275_v0, %v5326_v6  ;;  %v1865_v25 = vpop.f32.mrb[61].mxu0 }
 0x1c4   : > { %2161 = vst [vmem:[%s7245_s26 + $0x48] sm:$0xff] %v2113_v24  ;;  %v2020_v59 = vmul.f32 %v7275_v0, %v1865_v25  ;;  %v5327_v45 = vpop.f32.mrb[62].mxu0 }
 0x1c5   : > { %v2070_v14 = vadd.f32 %v7286_v46, %v2022_v3  ;;  %v2023_v62 = vmul.f32 %v7275_v0, %v5327_v45  ;;  %v1868_v18 = vpop.f32.mrb[63].mxu0 }
 0x1c6   : > { %v2068_v30 = vadd.f32 %v7286_v46, %v2020_v59  ;;  %v2021_v48 = vmul.f32 %v7275_v0, %v1868_v18 }
 0x1c7   : > { %v2118_v8 = vmax.f32 %v2070_v14, 0.0  ;;  %v2071_v19 = vadd.f32 %v7286_v46, %v2023_v62 }
 0x1c8   : > { %v2116_v49 = vmax.f32 %v2068_v30, 0.0  ;;  %v2069_v15 = vadd.f32 %v7286_v46, %v2021_v48 }
 0x1c9   : > { %2166 = vst [vmem:[%s7245_s26 + $0x70] sm:$0xff] %v2118_v8  ;;  %v2119_v34 = vmax.f32 %v2071_v19, 0.0 }
 0x1ca   : > { %2164 = vst [vmem:[%s7245_s26 + $0x60] sm:$0xff] %v2116_v49  ;;  %v2117_v20 = vmax.f32 %v2069_v15, 0.0  ;;  %v5330_v54 = vpop.f32.mrb[64].mxu0 }
 0x1cb   : > { %2167 = vst [vmem:[%s7245_s26 + $0x78] sm:$0xff] %v2119_v34  ;;  %v2026_v52 = vmul.f32 %v7275_v0, %v5330_v54  ;;  %v1881_v51 = vpop.f32.mrb[65].mxu0 }
 0x1cc   : > { %2165 = vst [vmem:[%s7245_s26 + $0x68] sm:$0xff] %v2117_v20  ;;  %v2024_v35 = vmul.f32 %v7275_v0, %v1881_v51  ;;  %v5331_v39 = vpop.f32.mrb[66].mxu0 }
 0x1cd   : > { %v2074_v36 = vadd.f32 %v7286_v46, %v2026_v52  ;;  %v2027_v37 = vmul.f32 %v7275_v0, %v5331_v39  ;;  %v1884_v26 = vpop.f32.mrb[67].mxu0 }
 0x1ce   : > { %v2072_v12 = vadd.f32 %v7286_v46, %v2024_v35  ;;  %v2025_v17 = vmul.f32 %v7275_v0, %v1884_v26 }
 0x1cf   : > { %v2122_v29 = vmax.f32 %v2074_v36, 0.0  ;;  %v2075_v31 = vadd.f32 %v7286_v46, %v2027_v37 }
 0x1d0   : > { %v2120_v28 = vmax.f32 %v2072_v12, 0.0  ;;  %v2073_v32 = vadd.f32 %v7286_v46, %v2025_v17 }
 0x1d1   : > { %2170 = vst [vmem:[%s7245_s26 + $0x90] sm:$0xff] %v2122_v29  ;;  %v2123_v22 = vmax.f32 %v2075_v31, 0.0 }
 0x1d2   : > { %2168 = vst [vmem:[%s7245_s26 + $0x80] sm:$0xff] %v2120_v28  ;;  %v2121_v41 = vmax.f32 %v2073_v32, 0.0  ;;  %v5334_v27 = vpop.f32.mrb[68].mxu0 }
 0x1d3   : > { %2171 = vst [vmem:[%s7245_s26 + $0x98] sm:$0xff] %v2123_v22  ;;  %v2030_v47 = vmul.f32 %v7275_v0, %v5334_v27  ;;  %v1897_v43 = vpop.f32.mrb[69].mxu0 }
 0x1d4   : > { %2169 = vst [vmem:[%s7245_s26 + $0x88] sm:$0xff] %v2121_v41  ;;  %v2028_v1 = vmul.f32 %v7275_v0, %v1897_v43  ;;  %v5335_v63 = vpop.f32.mrb[70].mxu0 }
 0x1d5   : > { %v2078_v16 = vadd.f32 %v7286_v46, %v2030_v47  ;;  %v2031_v2 = vmul.f32 %v7275_v0, %v5335_v63  ;;  %v1900_v60 = vpop.f32.mrb[71].mxu0 }
 0x1d6   : > { %v2076_v53 = vadd.f32 %v7286_v46, %v2028_v1  ;;  %v2029_v10 = vmul.f32 %v7275_v0, %v1900_v60 }
 0x1d7   : > { %v2126_v40 = vmax.f32 %v2078_v16, 0.0  ;;  %v2079_v23 = vadd.f32 %v7286_v46, %v2031_v2 }
 0x1d8   : > { %v2124_v9 = vmax.f32 %v2076_v53, 0.0  ;;  %v2077_v5 = vadd.f32 %v7286_v46, %v2029_v10 }
 0x1d9   : > { %2174 = vst [vmem:[%s7245_s26 + $0xb0] sm:$0xff] %v2126_v40  ;;  %v2127_v42 = vmax.f32 %v2079_v23, 0.0 }
 0x1da   : > { %2172 = vst [vmem:[%s7245_s26 + $0xa0] sm:$0xff] %v2124_v9  ;;  %v2125_v33 = vmax.f32 %v2077_v5, 0.0 }
 0x1db   : > { %2175 = vst [vmem:[%s7245_s26 + $0xb8] sm:$0xff] %v2127_v42 }
 0x1dc   : > { %2173 = vst [vmem:[%s7245_s26 + $0xa8] sm:$0xff] %v2125_v33 }
 0x23a   : > { %v5414_v58 = vpop.f32.mrb[96].mxu0 }
 0x23b   : > { %v2742_v44 = vmul.f32 %v7275_v0, %v5414_v58  ;;  %v2549_v55 = vpop.f32.mrb[97].mxu0 }
 0x23c   : > { %v5614_v61 = vpop.f32.mrb[24].mxu1  ;;  %v2740_v4 = vmul.f32 %v7275_v0, %v2549_v55  ;;  %v5415_v7 = vpop.f32.mrb[98].mxu0 }
 0x23d   : > { %v4209_v13 = vmul.f32 %v7275_v0, %v5614_v61  ;;  %v3968_v21 = vpop.f32.mrb[25].mxu1  ;;  %v2790_v57 = vadd.f32 %v7286_v46, %v2742_v44  ;;  %v2743_v38 = vmul.f32 %v7275_v0, %v5415_v7  ;;  %v2552_v6 = vpop.f32.mrb[99].mxu0 }
 0x23e   : > { %v4207_v56 = vmul.f32 %v7275_v0, %v3968_v21  ;;  %v5615_v11 = vpop.f32.mrb[26].mxu1  ;;  %v2788_v25 = vadd.f32 %v7286_v46, %v2740_v4  ;;  %v2741_v45 = vmul.f32 %v7275_v0, %v2552_v6 }
 0x23f   : > { %v4257_v50 = vadd.f32 %v7286_v46, %v4209_v13  ;;  %v4210_v24 = vmul.f32 %v7275_v0, %v5615_v11  ;;  %v3971_v3 = vpop.f32.mrb[27].mxu1  ;;  %v2838_v62 = vmax.f32 %v2790_v57, 0.0  ;;  %v2791_v30 = vadd.f32 %v7286_v46, %v2743_v38 }
 0x240   : > { %v4255_v59 = vadd.f32 %v7286_v46, %v4207_v56  ;;  %v4208_v14 = vmul.f32 %v7275_v0, %v3971_v3  ;;  %v2836_v8 = vmax.f32 %v2788_v25, 0.0  ;;  %v2789_v49 = vadd.f32 %v7286_v46, %v2741_v45 }
 0x241   : > { %v4305_v18 = vmax.f32 %v4257_v50, 0.0  ;;  %v4258_v48 = vadd.f32 %v7286_v46, %v4210_v24  ;;  %2886 = vst [vmem:[%s7495_s15 + $0x10] sm:$0xff] %v2838_v62  ;;  %v2839_v34 = vmax.f32 %v2791_v30, 0.0 }
 0x242   : > { %v4303_v19 = vmax.f32 %v4255_v59, 0.0  ;;  %v4256_v15 = vadd.f32 %v7286_v46, %v4208_v14  ;;  %2884 = vst [vmem:[%s7495_s15] sm:$0xff] %v2836_v8  ;;  %v2837_v54 = vmax.f32 %v2789_v49, 0.0  ;;  %v5418_v51 = vpop.f32.mrb[100].mxu0 }
 0x243   : > { %4353 = vst [vmem:[%s7501_s18 + $0x10] sm:$0xff] %v4305_v18  ;;  %v4306_v20 = vmax.f32 %v4258_v48, 0.0  ;;  %2887 = vst [vmem:[%s7495_s15 + $0x18] sm:$0xff] %v2839_v34  ;;  %v2746_v39 = vmul.f32 %v7275_v0, %v5418_v51  ;;  %v2565_v37 = vpop.f32.mrb[101].mxu0 }
 0x244   : > { %4351 = vst [vmem:[%s7501_s18] sm:$0xff] %v4303_v19  ;;  %v4304_v52 = vmax.f32 %v4256_v15, 0.0  ;;  %v5618_v35 = vpop.f32.mrb[28].mxu1  ;;  %2885 = vst [vmem:[%s7495_s15 + $0x8] sm:$0xff] %v2837_v54  ;;  %v2744_v12 = vmul.f32 %v7275_v0, %v2565_v37  ;;  %v5419_v29 = vpop.f32.mrb[102].mxu0 }
 0x245   : > { %4354 = vst [vmem:[%s7501_s18 + $0x18] sm:$0xff] %v4306_v20  ;;  %v4213_v36 = vmul.f32 %v7275_v0, %v5618_v35  ;;  %v3984_v26 = vpop.f32.mrb[29].mxu1  ;;  %v2794_v28 = vadd.f32 %v7286_v46, %v2746_v39  ;;  %v2747_v22 = vmul.f32 %v7275_v0, %v5419_v29  ;;  %v2568_v27 = vpop.f32.mrb[103].mxu0 }
 0x246   : > { %4352 = vst [vmem:[%s7501_s18 + $0x8] sm:$0xff] %v4304_v52  ;;  %v4211_v17 = vmul.f32 %v7275_v0, %v3984_v26  ;;  %v5619_v31 = vpop.f32.mrb[30].mxu1  ;;  %v2792_v43 = vadd.f32 %v7286_v46, %v2744_v12  ;;  %v2745_v63 = vmul.f32 %v7275_v0, %v2568_v27 }
 0x247   : > { %v4261_v32 = vadd.f32 %v7286_v46, %v4213_v36  ;;  %v4214_v41 = vmul.f32 %v7275_v0, %v5619_v31  ;;  %v3987_v47 = vpop.f32.mrb[31].mxu1  ;;  %v2842_v2 = vmax.f32 %v2794_v28, 0.0  ;;  %v2795_v53 = vadd.f32 %v7286_v46, %v2747_v22 }
 0x248   : > { %v4259_v1 = vadd.f32 %v7286_v46, %v4211_v17  ;;  %v4212_v16 = vmul.f32 %v7275_v0, %v3987_v47  ;;  %v2840_v40 = vmax.f32 %v2792_v43, 0.0  ;;  %v2793_v9 = vadd.f32 %v7286_v46, %v2745_v63 }
 0x249   : > { %v4309_v60 = vmax.f32 %v4261_v32, 0.0  ;;  %v4262_v10 = vadd.f32 %v7286_v46, %v4214_v41  ;;  %2890 = vst [vmem:[%s7495_s15 + $0x30] sm:$0xff] %v2842_v2  ;;  %v2843_v42 = vmax.f32 %v2795_v53, 0.0 }
 0x24a   : > { %v4307_v23 = vmax.f32 %v4259_v1, 0.0  ;;  %v4260_v5 = vadd.f32 %v7286_v46, %v4212_v16  ;;  %2888 = vst [vmem:[%s7495_s15 + $0x20] sm:$0xff] %v2840_v40  ;;  %v2841_v58 = vmax.f32 %v2793_v9, 0.0  ;;  %v5422_v44 = vpop.f32.mrb[104].mxu0 }
 0x24b   : > { %4357 = vst [vmem:[%s7501_s18 + $0x30] sm:$0xff] %v4309_v60  ;;  %v4310_v33 = vmax.f32 %v4262_v10, 0.0  ;;  %2891 = vst [vmem:[%s7495_s15 + $0x38] sm:$0xff] %v2843_v42  ;;  %v2750_v55 = vmul.f32 %v7275_v0, %v5422_v44  ;;  %v2581_v4 = vpop.f32.mrb[105].mxu0 }
 0x24c   : > { %4355 = vst [vmem:[%s7501_s18 + $0x20] sm:$0xff] %v4307_v23  ;;  %v4308_v61 = vmax.f32 %v4260_v5, 0.0  ;;  %v5622_v13 = vpop.f32.mrb[32].mxu1  ;;  %2889 = vst [vmem:[%s7495_s15 + $0x28] sm:$0xff] %v2841_v58  ;;  %v2748_v7 = vmul.f32 %v7275_v0, %v2581_v4  ;;  %v5423_v57 = vpop.f32.mrb[106].mxu0 }
 0x24d   : > { %4358 = vst [vmem:[%s7501_s18 + $0x38] sm:$0xff] %v4310_v33  ;;  %v4217_v21 = vmul.f32 %v7275_v0, %v5622_v13  ;;  %v4000_v56 = vpop.f32.mrb[33].mxu1  ;;  %v2798_v38 = vadd.f32 %v7286_v46, %v2750_v55  ;;  %v2751_v6 = vmul.f32 %v7275_v0, %v5423_v57  ;;  %v2584_v25 = vpop.f32.mrb[107].mxu0 }
 0x24e   : > { %4356 = vst [vmem:[%s7501_s18 + $0x28] sm:$0xff] %v4308_v61  ;;  %v4215_v11 = vmul.f32 %v7275_v0, %v4000_v56  ;;  %v5623_v50 = vpop.f32.mrb[34].mxu1  ;;  %v2796_v45 = vadd.f32 %v7286_v46, %v2748_v7  ;;  %v2749_v62 = vmul.f32 %v7275_v0, %v2584_v25 }
 0x24f   : > { %v4265_v24 = vadd.f32 %v7286_v46, %v4217_v21  ;;  %v4218_v3 = vmul.f32 %v7275_v0, %v5623_v50  ;;  %v4003_v59 = vpop.f32.mrb[35].mxu1  ;;  %v2846_v30 = vmax.f32 %v2798_v38, 0.0  ;;  %v2799_v8 = vadd.f32 %v7286_v46, %v2751_v6 }
 0x250   : > { %v4263_v14 = vadd.f32 %v7286_v46, %v4215_v11  ;;  %v4216_v18 = vmul.f32 %v7275_v0, %v4003_v59  ;;  %v2844_v49 = vmax.f32 %v2796_v45, 0.0  ;;  %v2797_v34 = vadd.f32 %v7286_v46, %v2749_v62 }
 0x251   : > { %v4313_v48 = vmax.f32 %v4265_v24, 0.0  ;;  %v4266_v19 = vadd.f32 %v7286_v46, %v4218_v3  ;;  %2894 = vst [vmem:[%s7495_s15 + $0x50] sm:$0xff] %v2846_v30  ;;  %v2847_v54 = vmax.f32 %v2799_v8, 0.0 }
 0x252   : > { %v4311_v15 = vmax.f32 %v4263_v14, 0.0  ;;  %v4264_v20 = vadd.f32 %v7286_v46, %v4216_v18  ;;  %2892 = vst [vmem:[%s7495_s15 + $0x40] sm:$0xff] %v2844_v49  ;;  %v2845_v51 = vmax.f32 %v2797_v34, 0.0  ;;  %v5426_v39 = vpop.f32.mrb[108].mxu0 }
 0x253   : > { %4361 = vst [vmem:[%s7501_s18 + $0x50] sm:$0xff] %v4313_v48  ;;  %v4314_v52 = vmax.f32 %v4266_v19, 0.0  ;;  %2895 = vst [vmem:[%s7495_s15 + $0x58] sm:$0xff] %v2847_v54  ;;  %v2754_v37 = vmul.f32 %v7275_v0, %v5426_v39  ;;  %v2597_v12 = vpop.f32.mrb[109].mxu0 }
 0x254   : > { %4359 = vst [vmem:[%s7501_s18 + $0x40] sm:$0xff] %v4311_v15  ;;  %v4312_v35 = vmax.f32 %v4264_v20, 0.0  ;;  %v5626_v36 = vpop.f32.mrb[36].mxu1  ;;  %2893 = vst [vmem:[%s7495_s15 + $0x48] sm:$0xff] %v2845_v51  ;;  %v2752_v29 = vmul.f32 %v7275_v0, %v2597_v12  ;;  %v5427_v28 = vpop.f32.mrb[110].mxu0 }
 0x255   : > { %4362 = vst [vmem:[%s7501_s18 + $0x58] sm:$0xff] %v4314_v52  ;;  %v4221_v26 = vmul.f32 %v7275_v0, %v5626_v36  ;;  %v4016_v17 = vpop.f32.mrb[37].mxu1  ;;  %v2802_v22 = vadd.f32 %v7286_v46, %v2754_v37  ;;  %v2755_v27 = vmul.f32 %v7275_v0, %v5427_v28  ;;  %v2600_v43 = vpop.f32.mrb[111].mxu0 }
 0x256   : > { %4360 = vst [vmem:[%s7501_s18 + $0x48] sm:$0xff] %v4312_v35  ;;  %v4219_v31 = vmul.f32 %v7275_v0, %v4016_v17  ;;  %v5627_v32 = vpop.f32.mrb[38].mxu1  ;;  %v2800_v63 = vadd.f32 %v7286_v46, %v2752_v29  ;;  %v2753_v2 = vmul.f32 %v7275_v0, %v2600_v43 }
 0x257   : > { %v4269_v41 = vadd.f32 %v7286_v46, %v4221_v26  ;;  %v4222_v47 = vmul.f32 %v7275_v0, %v5627_v32  ;;  %v4019_v1 = vpop.f32.mrb[39].mxu1  ;;  %v2850_v53 = vmax.f32 %v2802_v22, 0.0  ;;  %v2803_v40 = vadd.f32 %v7286_v46, %v2755_v27 }
 0x258   : > { %v4267_v16 = vadd.f32 %v7286_v46, %v4219_v31  ;;  %v4220_v60 = vmul.f32 %v7275_v0, %v4019_v1  ;;  %v2848_v9 = vmax.f32 %v2800_v63, 0.0  ;;  %v2801_v42 = vadd.f32 %v7286_v46, %v2753_v2 }
 0x259   : > { %v4317_v10 = vmax.f32 %v4269_v41, 0.0  ;;  %v4270_v23 = vadd.f32 %v7286_v46, %v4222_v47  ;;  %2898 = vst [vmem:[%s7495_s15 + $0x70] sm:$0xff] %v2850_v53  ;;  %v2851_v58 = vmax.f32 %v2803_v40, 0.0 }
 0x25a   : > { %v4315_v5 = vmax.f32 %v4267_v16, 0.0  ;;  %v4268_v33 = vadd.f32 %v7286_v46, %v4220_v60  ;;  %2896 = vst [vmem:[%s7495_s15 + $0x60] sm:$0xff] %v2848_v9  ;;  %v2849_v44 = vmax.f32 %v2801_v42, 0.0  ;;  %v5430_v55 = vpop.f32.mrb[112].mxu0 }
 0x25b   : > { %4365 = vst [vmem:[%s7501_s18 + $0x70] sm:$0xff] %v4317_v10  ;;  %v4318_v61 = vmax.f32 %v4270_v23, 0.0  ;;  %2899 = vst [vmem:[%s7495_s15 + $0x78] sm:$0xff] %v2851_v58  ;;  %v2758_v4 = vmul.f32 %v7275_v0, %v5430_v55  ;;  %v2613_v7 = vpop.f32.mrb[113].mxu0 }
 0x25c   : > { %4363 = vst [vmem:[%s7501_s18 + $0x60] sm:$0xff] %v4315_v5  ;;  %v4316_v13 = vmax.f32 %v4268_v33, 0.0  ;;  %v5630_v21 = vpop.f32.mrb[40].mxu1  ;;  %2897 = vst [vmem:[%s7495_s15 + $0x68] sm:$0xff] %v2849_v44  ;;  %v2756_v57 = vmul.f32 %v7275_v0, %v2613_v7  ;;  %v5431_v38 = vpop.f32.mrb[114].mxu0 }
 0x25d   : > { %4366 = vst [vmem:[%s7501_s18 + $0x78] sm:$0xff] %v4318_v61  ;;  %v4225_v56 = vmul.f32 %v7275_v0, %v5630_v21  ;;  %v4032_v11 = vpop.f32.mrb[41].mxu1  ;;  %v2806_v6 = vadd.f32 %v7286_v46, %v2758_v4  ;;  %v2759_v25 = vmul.f32 %v7275_v0, %v5431_v38  ;;  %v2616_v45 = vpop.f32.mrb[115].mxu0 }
 0x25e   : > { %4364 = vst [vmem:[%s7501_s18 + $0x68] sm:$0xff] %v4316_v13  ;;  %v4223_v50 = vmul.f32 %v7275_v0, %v4032_v11  ;;  %v5631_v24 = vpop.f32.mrb[42].mxu1  ;;  %v2804_v62 = vadd.f32 %v7286_v46, %v2756_v57  ;;  %v2757_v30 = vmul.f32 %v7275_v0, %v2616_v45  ;;  %v7648_v45 = vld [vmem:[%s7805_s3] ss:$0 sm:$0xff] }
 0x25f   : > { %v4273_v3 = vadd.f32 %v7286_v46, %v4225_v56  ;;  %v4226_v59 = vmul.f32 %v7275_v0, %v5631_v24  ;;  %v4035_v14 = vpop.f32.mrb[43].mxu1  ;;  %v2854_v8 = vmax.f32 %v2806_v6, 0.0  ;;  %v2807_v49 = vadd.f32 %v7286_v46, %v2759_v25 }
 0x260   : > { %v4271_v18 = vadd.f32 %v7286_v46, %v4223_v50  ;;  %v4224_v48 = vmul.f32 %v7275_v0, %v4035_v14  ;;  %v2852_v34 = vmax.f32 %v2804_v62, 0.0  ;;  %v2805_v54 = vadd.f32 %v7286_v46, %v2757_v30 }
 0x261   : > { %v4321_v19 = vmax.f32 %v4273_v3, 0.0  ;;  %v4274_v15 = vadd.f32 %v7286_v46, %v4226_v59  ;;  %2902 = vst [vmem:[%s7495_s15 + $0x90] sm:$0xff] %v2854_v8  ;;  %v2855_v51 = vmax.f32 %v2807_v49, 0.0 }
 0x262   : > { %v4319_v20 = vmax.f32 %v4271_v18, 0.0  ;;  %v4272_v52 = vadd.f32 %v7286_v46, %v4224_v48  ;;  %2900 = vst [vmem:[%s7495_s15 + $0x80] sm:$0xff] %v2852_v34  ;;  %v2853_v39 = vmax.f32 %v2805_v54, 0.0  ;;  %v5434_v37 = vpop.f32.mrb[116].mxu0 }
 0x263   : > { %4369 = vst [vmem:[%s7501_s18 + $0x90] sm:$0xff] %v4321_v19  ;;  %v4322_v35 = vmax.f32 %v4274_v15, 0.0  ;;  %2903 = vst [vmem:[%s7495_s15 + $0x98] sm:$0xff] %v2855_v51  ;;  %v2762_v12 = vmul.f32 %v7275_v0, %v5434_v37  ;;  %v2629_v29 = vpop.f32.mrb[117].mxu0 }
 0x264   : > { %4367 = vst [vmem:[%s7501_s18 + $0x80] sm:$0xff] %v4319_v20  ;;  %v4320_v36 = vmax.f32 %v4272_v52, 0.0  ;;  %v5634_v26 = vpop.f32.mrb[44].mxu1  ;;  %2901 = vst [vmem:[%s7495_s15 + $0x88] sm:$0xff] %v2853_v39  ;;  %v2760_v28 = vmul.f32 %v7275_v0, %v2629_v29  ;;  %v5435_v22 = vpop.f32.mrb[118].mxu0 }
 0x265   : > { %4370 = vst [vmem:[%s7501_s18 + $0x98] sm:$0xff] %v4322_v35  ;;  %v4229_v17 = vmul.f32 %v7275_v0, %v5634_v26  ;;  %v4048_v31 = vpop.f32.mrb[45].mxu1  ;;  %v2810_v27 = vadd.f32 %v7286_v46, %v2762_v12  ;;  %v2763_v43 = vmul.f32 %v7275_v0, %v5435_v22  ;;  %v2632_v63 = vpop.f32.mrb[119].mxu0 }
 0x266   : > { %4368 = vst [vmem:[%s7501_s18 + $0x88] sm:$0xff] %v4320_v36  ;;  %v4227_v32 = vmul.f32 %v7275_v0, %v4048_v31  ;;  %v5635_v41 = vpop.f32.mrb[46].mxu1  ;;  %v2808_v2 = vadd.f32 %v7286_v46, %v2760_v28  ;;  %v2761_v53 = vmul.f32 %v7275_v0, %v2632_v63 }
 0x267   : > { %v4277_v47 = vadd.f32 %v7286_v46, %v4229_v17  ;;  %v4230_v1 = vmul.f32 %v7275_v0, %v5635_v41  ;;  %v4051_v16 = vpop.f32.mrb[47].mxu1  ;;  %v2858_v40 = vmax.f32 %v2810_v27, 0.0  ;;  %v2811_v9 = vadd.f32 %v7286_v46, %v2763_v43 }
 0x268   : > { %v4275_v60 = vadd.f32 %v7286_v46, %v4227_v32  ;;  %v4228_v10 = vmul.f32 %v7275_v0, %v4051_v16  ;;  %v2856_v42 = vmax.f32 %v2808_v2, 0.0  ;;  %v2809_v58 = vadd.f32 %v7286_v46, %v2761_v53 }
 0x269   : > { %v4325_v23 = vmax.f32 %v4277_v47, 0.0  ;;  %v4278_v5 = vadd.f32 %v7286_v46, %v4230_v1  ;;  %2906 = vst [vmem:[%s7495_s15 + $0xb0] sm:$0xff] %v2858_v40  ;;  %v2859_v44 = vmax.f32 %v2811_v9, 0.0 }
 0x26a   : > { %v4323_v33 = vmax.f32 %v4275_v60, 0.0  ;;  %v4276_v61 = vadd.f32 %v7286_v46, %v4228_v10  ;;  %2904 = vst [vmem:[%s7495_s15 + $0xa0] sm:$0xff] %v2856_v42  ;;  %v2857_v55 = vmax.f32 %v2809_v58, 0.0  ;;  %v5438_v4 = vpop.f32.mrb[120].mxu0 }
 0x26b   : > { %4373 = vst [vmem:[%s7501_s18 + $0xb0] sm:$0xff] %v4325_v23  ;;  %v4326_v13 = vmax.f32 %v4278_v5, 0.0  ;;  %2907 = vst [vmem:[%s7495_s15 + $0xb8] sm:$0xff] %v2859_v44  ;;  %v2766_v7 = vmul.f32 %v7275_v0, %v5438_v4  ;;  %v2645_v57 = vpop.f32.mrb[121].mxu0 }
 0x26c   : > { %4371 = vst [vmem:[%s7501_s18 + $0xa0] sm:$0xff] %v4323_v33  ;;  %v4324_v21 = vmax.f32 %v4276_v61, 0.0  ;;  %v5638_v56 = vpop.f32.mrb[48].mxu1  ;;  %2905 = vst [vmem:[%s7495_s15 + $0xa8] sm:$0xff] %v2857_v55  ;;  %v2764_v38 = vmul.f32 %v7275_v0, %v2645_v57  ;;  %v5439_v6 = vpop.f32.mrb[122].mxu0 }
 0x26d   : > { %4374 = vst [vmem:[%s7501_s18 + $0xb8] sm:$0xff] %v4326_v13  ;;  %v4233_v11 = vmul.f32 %v7275_v0, %v5638_v56  ;;  %v4064_v50 = vpop.f32.mrb[49].mxu1  ;;  %v2814_v25 = vadd.f32 %v7286_v46, %v2766_v7  ;;  %v2767_v14 = vmul.f32 %v7648_v45, %v5439_v6  ;;  %v2648_v18 = vpop.f32.mrb[123].mxu0 }
 0x26e   : > { %4372 = vst [vmem:[%s7501_s18 + $0xa8] sm:$0xff] %v4324_v21  ;;  %v4231_v24 = vmul.f32 %v7275_v0, %v4064_v50  ;;  %v5639_v3 = vpop.f32.mrb[50].mxu1  ;;  %v7655_v0 = vld [vmem:[%s7806_s4] ss:$0 sm:$0xff]  ;;  %v2765_v8 = vmul.f32 %v7648_v45, %v2648_v18 }
 0x26f   : > { %v4281_v59 = vadd.f32 %v7286_v46, %v4233_v11  ;;  %v4234_v62 = vmul.f32 %v7648_v45, %v5639_v3  ;;  %v4067_v30 = vpop.f32.mrb[51].mxu1  ;;  %v2812_v46 = vadd.f32 %v7655_v0, %v2764_v38  ;;  %v2862_v49 = vmax.f32 %v2814_v25, 0.0 }
 0x270   : > { %v4279_v48 = vadd.f32 %v7655_v0, %v4231_v24  ;;  %v4232_v19 = vmul.f32 %v7648_v45, %v4067_v30  ;;  %v2815_v34 = vadd.f32 %v7655_v0, %v2767_v14  ;;  %v2813_v51 = vadd.f32 %v7655_v0, %v2765_v8 }
 0x271   : > { %v4329_v15 = vmax.f32 %v4281_v59, 0.0  ;;  %v4282_v20 = vadd.f32 %v7655_v0, %v4234_v62  ;;  %v2860_v54 = vmax.f32 %v2812_v46, 0.0  ;;  %2910 = vst [vmem:[%s7495_s15 + $0xd0] sm:$0xff] %v2862_v49 }
 0x272   : > { %v4327_v52 = vmax.f32 %v4279_v48, 0.0  ;;  %v4280_v35 = vadd.f32 %v7655_v0, %v4232_v19  ;;  %v2863_v39 = vmax.f32 %v2815_v34, 0.0  ;;  %v2861_v37 = vmax.f32 %v2813_v51, 0.0  ;;  %v5442_v12 = vpop.f32.mrb[124].mxu0 }
 0x273   : > { %4377 = vst [vmem:[%s7501_s18 + $0xd0] sm:$0xff] %v4329_v15  ;;  %v4330_v36 = vmax.f32 %v4282_v20, 0.0  ;;  %2908 = vst [vmem:[%s7495_s15 + $0xc0] sm:$0xff] %v2860_v54  ;;  %v2770_v29 = vmul.f32 %v7648_v45, %v5442_v12  ;;  %v2661_v28 = vpop.f32.mrb[125].mxu0 }
 0x274   : > { %4375 = vst [vmem:[%s7501_s18 + $0xc0] sm:$0xff] %v4327_v52  ;;  %v4328_v26 = vmax.f32 %v4280_v35, 0.0  ;;  %v5642_v17 = vpop.f32.mrb[52].mxu1  ;;  %2911 = vst [vmem:[%s7495_s15 + $0xd8] sm:$0xff] %v2863_v39  ;;  %v2768_v22 = vmul.f32 %v7648_v45, %v2661_v28  ;;  %v5443_v27 = vpop.f32.mrb[126].mxu0 }
 0x275   : > { %4378 = vst [vmem:[%s7501_s18 + $0xd8] sm:$0xff] %v4330_v36  ;;  %v4237_v31 = vmul.f32 %v7648_v45, %v5642_v17  ;;  %v4080_v32 = vpop.f32.mrb[53].mxu1  ;;  %2909 = vst [vmem:[%s7495_s15 + $0xc8] sm:$0xff] %v2861_v37  ;;  %v2818_v43 = vadd.f32 %v7655_v0, %v2770_v29  ;;  %v2771_v63 = vmul.f32 %v7648_v45, %v5443_v27  ;;  %v2664_v2 = vpop.f32.mrb[127].mxu0 }
 0x276   : > { %4376 = vst [vmem:[%s7501_s18 + $0xc8] sm:$0xff] %v4328_v26  ;;  %v4235_v41 = vmul.f32 %v7648_v45, %v4080_v32  ;;  %v5643_v47 = vpop.f32.mrb[54].mxu1  ;;  %v2816_v53 = vadd.f32 %v7655_v0, %v2768_v22  ;;  %v2769_v40 = vmul.f32 %v7648_v45, %v2664_v2 }
 0x277   : > { %v4285_v1 = vadd.f32 %v7655_v0, %v4237_v31  ;;  %v4238_v16 = vmul.f32 %v7648_v45, %v5643_v47  ;;  %v4083_v60 = vpop.f32.mrb[55].mxu1  ;;  %v2866_v9 = vmax.f32 %v2818_v43, 0.0  ;;  %v2819_v42 = vadd.f32 %v7655_v0, %v2771_v63 }
 0x278   : > { %v4283_v10 = vadd.f32 %v7655_v0, %v4235_v41  ;;  %v4236_v23 = vmul.f32 %v7648_v45, %v4083_v60  ;;  %v2864_v58 = vmax.f32 %v2816_v53, 0.0  ;;  %v2817_v44 = vadd.f32 %v7655_v0, %v2769_v40 }
 0x279   : > { %v4333_v5 = vmax.f32 %v4285_v1, 0.0  ;;  %v4286_v33 = vadd.f32 %v7655_v0, %v4238_v16  ;;  %2914 = vst [vmem:[%s7495_s15 + $0xf0] sm:$0xff] %v2866_v9  ;;  %v2867_v55 = vmax.f32 %v2819_v42, 0.0 }
 0x27a   : > { %v4331_v61 = vmax.f32 %v4283_v10, 0.0  ;;  %v4284_v13 = vadd.f32 %v7655_v0, %v4236_v23  ;;  %2912 = vst [vmem:[%s7495_s15 + $0xe0] sm:$0xff] %v2864_v58  ;;  %v2865_v4 = vmax.f32 %v2817_v44, 0.0  ;;  %v5446_v7 = vpop.f32.mrb[128].mxu0 }
 0x27b   : > { %4381 = vst [vmem:[%s7501_s18 + $0xf0] sm:$0xff] %v4333_v5  ;;  %v4334_v21 = vmax.f32 %v4286_v33, 0.0  ;;  %2915 = vst [vmem:[%s7495_s15 + $0xf8] sm:$0xff] %v2867_v55  ;;  %v2774_v57 = vmul.f32 %v7648_v45, %v5446_v7  ;;  %v2677_v38 = vpop.f32.mrb[129].mxu0 }
 0x27c   : > { %4379 = vst [vmem:[%s7501_s18 + $0xe0] sm:$0xff] %v4331_v61  ;;  %v4332_v56 = vmax.f32 %v4284_v13, 0.0  ;;  %v5646_v11 = vpop.f32.mrb[56].mxu1  ;;  %2913 = vst [vmem:[%s7495_s15 + $0xe8] sm:$0xff] %v2865_v4  ;;  %v2772_v6 = vmul.f32 %v7648_v45, %v2677_v38  ;;  %v5447_v25 = vpop.f32.mrb[130].mxu0 }
 0x27d   : > { %4382 = vst [vmem:[%s7501_s18 + $0xf8] sm:$0xff] %v4334_v21  ;;  %v4241_v50 = vmul.f32 %v7648_v45, %v5646_v11  ;;  %v4096_v24 = vpop.f32.mrb[57].mxu1  ;;  %v2822_v14 = vadd.f32 %v7655_v0, %v2774_v57  ;;  %v2775_v18 = vmul.f32 %v7648_v45, %v5447_v25  ;;  %v2680_v46 = vpop.f32.mrb[131].mxu0 }
 0x27e   : > { %4380 = vst [vmem:[%s7501_s18 + $0xe8] sm:$0xff] %v4332_v56  ;;  %v4239_v3 = vmul.f32 %v7648_v45, %v4096_v24  ;;  %v5647_v59 = vpop.f32.mrb[58].mxu1  ;;  %v2820_v8 = vadd.f32 %v7655_v0, %v2772_v6  ;;  %v2773_v49 = vmul.f32 %v7648_v45, %v2680_v46 }
 0x27f   : > { %v4289_v62 = vadd.f32 %v7655_v0, %v4241_v50  ;;  %v4242_v30 = vmul.f32 %v7648_v45, %v5647_v59  ;;  %v4099_v48 = vpop.f32.mrb[59].mxu1  ;;  %v2870_v34 = vmax.f32 %v2822_v14, 0.0  ;;  %v2823_v54 = vadd.f32 %v7655_v0, %v2775_v18 }
 0x280   : > { %v4287_v19 = vadd.f32 %v7655_v0, %v4239_v3  ;;  %v4240_v15 = vmul.f32 %v7648_v45, %v4099_v48  ;;  %v2868_v51 = vmax.f32 %v2820_v8, 0.0  ;;  %v2821_v39 = vadd.f32 %v7655_v0, %v2773_v49 }
 0x281   : > { %v4337_v20 = vmax.f32 %v4289_v62, 0.0  ;;  %v4290_v52 = vadd.f32 %v7655_v0, %v4242_v30  ;;  %2918 = vst [vmem:[%s7495_s15 + $0x110] sm:$0xff] %v2870_v34  ;;  %v2871_v37 = vmax.f32 %v2823_v54, 0.0 }
 0x282   : > { %v4335_v35 = vmax.f32 %v4287_v19, 0.0  ;;  %v4288_v36 = vadd.f32 %v7655_v0, %v4240_v15  ;;  %2916 = vst [vmem:[%s7495_s15 + $0x100] sm:$0xff] %v2868_v51  ;;  %v2869_v12 = vmax.f32 %v2821_v39, 0.0  ;;  %v5450_v29 = vpop.f32.mrb[132].mxu0 }
 0x283   : > { %4385 = vst [vmem:[%s7501_s18 + $0x110] sm:$0xff] %v4337_v20  ;;  %v4338_v26 = vmax.f32 %v4290_v52, 0.0  ;;  %2919 = vst [vmem:[%s7495_s15 + $0x118] sm:$0xff] %v2871_v37  ;;  %v2778_v28 = vmul.f32 %v7648_v45, %v5450_v29  ;;  %v2693_v22 = vpop.f32.mrb[133].mxu0 }
 0x284   : > { %4383 = vst [vmem:[%s7501_s18 + $0x100] sm:$0xff] %v4335_v35  ;;  %v4336_v17 = vmax.f32 %v4288_v36, 0.0  ;;  %v5650_v31 = vpop.f32.mrb[60].mxu1  ;;  %2917 = vst [vmem:[%s7495_s15 + $0x108] sm:$0xff] %v2869_v12  ;;  %v2776_v27 = vmul.f32 %v7648_v45, %v2693_v22  ;;  %v5451_v43 = vpop.f32.mrb[134].mxu0 }
 0x285   : > { %4386 = vst [vmem:[%s7501_s18 + $0x118] sm:$0xff] %v4338_v26  ;;  %v4245_v32 = vmul.f32 %v7648_v45, %v5650_v31  ;;  %v4112_v41 = vpop.f32.mrb[61].mxu1  ;;  %v2826_v63 = vadd.f32 %v7655_v0, %v2778_v28  ;;  %v2779_v2 = vmul.f32 %v7648_v45, %v5451_v43  ;;  %v2696_v53 = vpop.f32.mrb[135].mxu0 }
 0x286   : > { %4384 = vst [vmem:[%s7501_s18 + $0x108] sm:$0xff] %v4336_v17  ;;  %v4243_v47 = vmul.f32 %v7648_v45, %v4112_v41  ;;  %v5651_v1 = vpop.f32.mrb[62].mxu1  ;;  %v2824_v40 = vadd.f32 %v7655_v0, %v2776_v27  ;;  %v2777_v9 = vmul.f32 %v7648_v45, %v2696_v53 }
 0x287   : > { %v4293_v16 = vadd.f32 %v7655_v0, %v4245_v32  ;;  %v4246_v60 = vmul.f32 %v7648_v45, %v5651_v1  ;;  %v4115_v10 = vpop.f32.mrb[63].mxu1  ;;  %v2874_v42 = vmax.f32 %v2826_v63, 0.0  ;;  %v2827_v58 = vadd.f32 %v7655_v0, %v2779_v2 }
 0x288   : > { %v4291_v23 = vadd.f32 %v7655_v0, %v4243_v47  ;;  %v4244_v5 = vmul.f32 %v7648_v45, %v4115_v10  ;;  %v2872_v44 = vmax.f32 %v2824_v40, 0.0  ;;  %v2825_v55 = vadd.f32 %v7655_v0, %v2777_v9 }
 0x289   : > { %v4341_v33 = vmax.f32 %v4293_v16, 0.0  ;;  %v4294_v61 = vadd.f32 %v7655_v0, %v4246_v60  ;;  %2922 = vst [vmem:[%s7495_s15 + $0x130] sm:$0xff] %v2874_v42  ;;  %v2875_v4 = vmax.f32 %v2827_v58, 0.0 }
 0x28a   : > { %v4339_v13 = vmax.f32 %v4291_v23, 0.0  ;;  %v4292_v21 = vadd.f32 %v7655_v0, %v4244_v5  ;;  %2920 = vst [vmem:[%s7495_s15 + $0x120] sm:$0xff] %v2872_v44  ;;  %v2873_v7 = vmax.f32 %v2825_v55, 0.0  ;;  %v5454_v57 = vpop.f32.mrb[136].mxu0 }
 0x28b   : > { %4389 = vst [vmem:[%s7501_s18 + $0x130] sm:$0xff] %v4341_v33  ;;  %v4342_v56 = vmax.f32 %v4294_v61, 0.0  ;;  %2923 = vst [vmem:[%s7495_s15 + $0x138] sm:$0xff] %v2875_v4  ;;  %v2782_v38 = vmul.f32 %v7648_v45, %v5454_v57  ;;  %v2709_v6 = vpop.f32.mrb[137].mxu0 }
 0x28c   : > { %4387 = vst [vmem:[%s7501_s18 + $0x120] sm:$0xff] %v4339_v13  ;;  %v4340_v11 = vmax.f32 %v4292_v21, 0.0  ;;  %v5654_v50 = vpop.f32.mrb[64].mxu1  ;;  %2921 = vst [vmem:[%s7495_s15 + $0x128] sm:$0xff] %v2873_v7  ;;  %v2780_v25 = vmul.f32 %v7648_v45, %v2709_v6  ;;  %v5455_v14 = vpop.f32.mrb[138].mxu0 }
 0x28d   : > { %4390 = vst [vmem:[%s7501_s18 + $0x138] sm:$0xff] %v4342_v56  ;;  %v4249_v24 = vmul.f32 %v7648_v45, %v5654_v50  ;;  %v4128_v3 = vpop.f32.mrb[65].mxu1  ;;  %v2830_v18 = vadd.f32 %v7655_v0, %v2782_v38  ;;  %v2783_v46 = vmul.f32 %v7648_v45, %v5455_v14  ;;  %v2712_v8 = vpop.f32.mrb[139].mxu0 }
 0x28e   : > { %4388 = vst [vmem:[%s7501_s18 + $0x128] sm:$0xff] %v4340_v11  ;;  %v4247_v59 = vmul.f32 %v7648_v45, %v4128_v3  ;;  %v5655_v62 = vpop.f32.mrb[66].mxu1  ;;  %v2828_v49 = vadd.f32 %v7655_v0, %v2780_v25  ;;  %v2781_v34 = vmul.f32 %v7648_v45, %v2712_v8 }
 0x28f   : > { %v4297_v30 = vadd.f32 %v7655_v0, %v4249_v24  ;;  %v4250_v48 = vmul.f32 %v7648_v45, %v5655_v62  ;;  %v4131_v19 = vpop.f32.mrb[67].mxu1  ;;  %v2878_v54 = vmax.f32 %v2830_v18, 0.0  ;;  %v2831_v51 = vadd.f32 %v7655_v0, %v2783_v46 }
 0x290   : > { %v4295_v15 = vadd.f32 %v7655_v0, %v4247_v59  ;;  %v4248_v20 = vmul.f32 %v7648_v45, %v4131_v19  ;;  %v2876_v39 = vmax.f32 %v2828_v49, 0.0  ;;  %v2829_v37 = vadd.f32 %v7655_v0, %v2781_v34 }
 0x291   : > { %v4345_v52 = vmax.f32 %v4297_v30, 0.0  ;;  %v4298_v35 = vadd.f32 %v7655_v0, %v4250_v48  ;;  %2926 = vst [vmem:[%s7495_s15 + $0x150] sm:$0xff] %v2878_v54  ;;  %v2879_v12 = vmax.f32 %v2831_v51, 0.0 }
 0x292   : > { %v4343_v36 = vmax.f32 %v4295_v15, 0.0  ;;  %v4296_v26 = vadd.f32 %v7655_v0, %v4248_v20  ;;  %2924 = vst [vmem:[%s7495_s15 + $0x140] sm:$0xff] %v2876_v39  ;;  %v2877_v29 = vmax.f32 %v2829_v37, 0.0  ;;  %v5458_v28 = vpop.f32.mrb[140].mxu0 }
 0x293   : > { %4393 = vst [vmem:[%s7501_s18 + $0x150] sm:$0xff] %v4345_v52  ;;  %v4346_v17 = vmax.f32 %v4298_v35, 0.0  ;;  %2927 = vst [vmem:[%s7495_s15 + $0x158] sm:$0xff] %v2879_v12  ;;  %v2786_v22 = vmul.f32 %v7648_v45, %v5458_v28  ;;  %v2725_v27 = vpop.f32.mrb[141].mxu0 }
 0x294   : > { %4391 = vst [vmem:[%s7501_s18 + $0x140] sm:$0xff] %v4343_v36  ;;  %v4344_v31 = vmax.f32 %v4296_v26, 0.0  ;;  %v5658_v32 = vpop.f32.mrb[68].mxu1  ;;  %2925 = vst [vmem:[%s7495_s15 + $0x148] sm:$0xff] %v2877_v29  ;;  %v2784_v43 = vmul.f32 %v7648_v45, %v2725_v27  ;;  %v5459_v63 = vpop.f32.mrb[142].mxu0 }
 0x295   : > { %4394 = vst [vmem:[%s7501_s18 + $0x158] sm:$0xff] %v4346_v17  ;;  %v4253_v41 = vmul.f32 %v7648_v45, %v5658_v32  ;;  %v4144_v47 = vpop.f32.mrb[69].mxu1  ;;  %v2834_v2 = vadd.f32 %v7655_v0, %v2786_v22  ;;  %v2787_v53 = vmul.f32 %v7648_v45, %v5459_v63  ;;  %v2728_v40 = vpop.f32.mrb[143].mxu0 }
 0x296   : > { %4392 = vst [vmem:[%s7501_s18 + $0x148] sm:$0xff] %v4344_v31  ;;  %v4251_v1 = vmul.f32 %v7648_v45, %v4144_v47  ;;  %v5659_v16 = vpop.f32.mrb[70].mxu1  ;;  %v2832_v9 = vadd.f32 %v7655_v0, %v2784_v43  ;;  %v2785_v42 = vmul.f32 %v7648_v45, %v2728_v40 }
 0x297   : > { %v4301_v60 = vadd.f32 %v7655_v0, %v4253_v41  ;;  %v4254_v10 = vmul.f32 %v7648_v45, %v5659_v16  ;;  %v4147_v23 = vpop.f32.mrb[71].mxu1  ;;  %v2882_v58 = vmax.f32 %v2834_v2, 0.0  ;;  %v2835_v44 = vadd.f32 %v7655_v0, %v2787_v53 }
 0x298   : > { %v4299_v5 = vadd.f32 %v7655_v0, %v4251_v1  ;;  %v4252_v33 = vmul.f32 %v7648_v45, %v4147_v23  ;;  %v2880_v55 = vmax.f32 %v2832_v9, 0.0  ;;  %v2833_v4 = vadd.f32 %v7655_v0, %v2785_v42 }
 0x299   : > { %v4349_v61 = vmax.f32 %v4301_v60, 0.0  ;;  %v4302_v13 = vadd.f32 %v7655_v0, %v4254_v10  ;;  %2930 = vst [vmem:[%s7495_s15 + $0x170] sm:$0xff] %v2882_v58  ;;  %v2883_v7 = vmax.f32 %v2835_v44, 0.0 }
 0x29a   : > { %v4347_v21 = vmax.f32 %v4299_v5, 0.0  ;;  %v4300_v56 = vadd.f32 %v7655_v0, %v4252_v33  ;;  %2928 = vst [vmem:[%s7495_s15 + $0x160] sm:$0xff] %v2880_v55  ;;  %v2881_v11 = vmax.f32 %v2833_v4, 0.0 }
 0x29b   : > { %4397 = vst [vmem:[%s7501_s18 + $0x170] sm:$0xff] %v4349_v61  ;;  %v4350_v45 = vmax.f32 %v4302_v13, 0.0  ;;  %2931 = vst [vmem:[%s7495_s15 + $0x178] sm:$0xff] %v2883_v7 }
 0x29c   : > { %4395 = vst [vmem:[%s7501_s18 + $0x160] sm:$0xff] %v4347_v21  ;;  %v4348_v57 = vmax.f32 %v4300_v56, 0.0  ;;  %2929 = vst [vmem:[%s7495_s15 + $0x168] sm:$0xff] %v2881_v11 }
 0x29d   : > { %4398 = vst [vmem:[%s7501_s18 + $0x178] sm:$0xff] %v4350_v45 }
 0x29e   : > { %4396 = vst [vmem:[%s7501_s18 + $0x168] sm:$0xff] %v4348_v57 }
 0x29f PF: > { %s19_s29 = sadd.s32 1, %s6034_s29   ;;  %s7939_s27 = smov %s6030_s28 }
 0x2a0   : > { %p16_p5 = scmp.ge.s32.totalorder %s19_s29, 4   ;;  %s7940_s28 = smov %s7942_s30 }
 0x2a2   :  { %18 = sbr.rel (!%p16_p5) target bundleno = 2 (0x2), region = 117 }

</bundles_post_ra>
